<compile_context>
chip_gen: v5e
topology: v5e:2x2
jax: 0.10.0
libtpu: 0.0.40
codegen_flags: <defaults>
</compile_context>

<pallas_src>
import math

import jax
import jax.numpy as jnp
from jax.experimental import pallas as pl
from jax.experimental.pallas import tpu as pltpu


# ----------------------------- fused kernel ----------------------------------

def make_fused_rnn_kernel(num_layers, T, B, H):
    """Single-invocation kernel: all RNN layers + final FC.

    Ref layout (positional):
      x_ref                               (T*B, D_in)  time-major, flattened
      [wih_t, whh_t, bias] * num_layers   (D_l, H), (H, H), (1, H)
      h0_ref                              (num_layers, B, H)
      fcw_t_ref, fcb_ref                  (H, C), (1, C)
      out_ref                             (B, C)
      xproj_ref, acts_ref                 VMEM scratch, (T*B, H) each
    """

    def kernel(*refs):
        x_ref = refs[0]
        layer_refs = refs[1:1 + 3 * num_layers]
        (h0_ref, fcw_t_ref, fcb_ref,
         out_ref, xproj_ref, acts_ref) = refs[1 + 3 * num_layers:]

        h = None
        for l in range(num_layers):
            wih_t = layer_refs[3 * l][...]       # (D_l, H)
            whh_t = layer_refs[3 * l + 1][...]   # (H, H)  (hoisted out of time loop)
            bias = layer_refs[3 * l + 2][...]    # (1, H)

            # Hoisted input projection for the whole sequence: one MXU matmul.
            src = x_ref if l == 0 else acts_ref
            xproj_ref[...] = (
                jnp.dot(src[...], wih_t, preferred_element_type=jnp.float32)
                + bias
            )

            h = h0_ref[l]                        # (B, H)
            # Recurrence: only h_{t-1} @ W_hh^T is serialized.  T is small and
            # static -> fully unrolled for LLO scheduling visibility.
            for t in range(T):
                pre = xproj_ref[pl.ds(t * B, B), :] + jnp.dot(
                    h, whh_t, preferred_element_type=jnp.float32)
                h = jnp.tanh(pre)
                if l < num_layers - 1:
                    # Feed next layer; never leaves VMEM.
                    acts_ref[pl.ds(t * B, B), :] = h

        # Final Linear on the last timestep of the top layer (fc(x[:, -1, :])).
        out_ref[...] = (
            jnp.dot(h, fcw_t_ref[...], preferred_element_type=jnp.float32)
            + fcb_ref[...]
        )

    return kernel


def rnn_forward(x, params, num_layers):
    """x: (B, input_size, T) — same layout the PyTorch module receives (NCL)."""
    B, D_in, T = x.shape
    H = params["w_hh_t_0"].shape[0]
    C = params["fc_w_t"].shape[1]

    # Layout plumbing once, outside the kernel:
    #   permute(0,2,1) -> (B,T,D); time-major (T,B,D); flatten to (T*B, D).
    x_tm = jnp.transpose(x, (2, 0, 1)).reshape(T * B, D_in)

    inputs = [x_tm]
    for l in range(num_layers):
        inputs += [params[f"w_ih_t_{l}"], params[f"w_hh_t_{l}"], params[f"bias_{l}"]]
    inputs += [params["h0"], params["fc_w_t"], params["fc_b"]]

    kernel = make_fused_rnn_kernel(num_layers, T, B, H)
    return pl.pallas_call(
        kernel,
        out_shape=jax.ShapeDtypeStruct((B, C), jnp.float32),
        scratch_shapes=[
            pltpu.VMEM((T * B, H), jnp.float32),   # per-layer input projection
            pltpu.VMEM((T * B, H), jnp.float32),   # previous-layer activations
        ],
    )(*inputs)


# ------------------------------- parameters ----------------------------------

def make_params(key, input_size, classes, hidden_size, num_layers, batch):
    """Deterministic init matching the PyTorch shapes; stored kernel-ready
    (weights pre-transposed, biases combined)."""
    params = {}
    k = 1.0 / math.sqrt(hidden_size)
    keys = jax.random.split(key, 4 * num_layers + 3)
    ki = 0
    for l in range(num_layers):
        d_in = input_size if l == 0 else hidden_size
        w_ih = jax.random.uniform(keys[ki], (hidden_size, d_in), minval=-k, maxval=k); ki += 1
        w_hh = jax.random.uniform(keys[ki], (hidden_size, hidden_size), minval=-k, maxval=k); ki += 1
        b_ih = jax.random.uniform(keys[ki], (hidden_size,), minval=-k, maxval=k); ki += 1
        b_hh = jax.random.uniform(keys[ki], (hidden_size,), minval=-k, maxval=k); ki += 1
        params[f"w_ih_t_{l}"] = w_ih.T                                   # (D_l, H)
        params[f"w_hh_t_{l}"] = w_hh.T                                   # (H, H)
        params[f"bias_{l}"] = (b_ih + b_hh).reshape(1, hidden_size)      # (1, H)
    fc_w = jax.random.uniform(keys[ki], (classes, hidden_size), minval=-k, maxval=k); ki += 1
    fc_b = jax.random.uniform(keys[ki], (classes,), minval=-k, maxval=k); ki += 1
    params["fc_w_t"] = fc_w.T                                            # (H, C)
    params["fc_b"] = fc_b.reshape(1, classes)                            # (1, C)
    # h0 = xavier_uniform_(randn(L, B, H)) in the torch forward.
    # TODO(synk): torch's exact RNG sequence for h0 is not reproducible here; we use
    # the same xavier-uniform bound (fan_in=B*H, fan_out=L*H) with a JAX key.
    fan_in, fan_out = batch * hidden_size, num_layers * hidden_size
    bound = math.sqrt(6.0 / (fan_in + fan_out))
    params["h0"] = jax.random.uniform(keys[ki], (num_layers, batch, hidden_size),
                                      minval=-bound, maxval=bound)
    return params


# ------------------------- pure-JAX reference (check) -------------------------

def rnn_forward_reference(x, params, num_layers):
    hp = jax.lax.Precision.HIGHEST
    B, D_in, T = x.shape
    seq = jnp.transpose(x, (2, 0, 1))          # (T, B, D_in)
    h = None
    for l in range(num_layers):
        wih_t = params[f"w_ih_t_{l}"]
        whh_t = params[f"w_hh_t_{l}"]
        bias = params[f"bias_{l}"]
        h = params["h0"][l]
        outs = []
        for t in range(T):
            h = jnp.tanh(jnp.dot(seq[t], wih_t, precision=hp)
                         + jnp.dot(h, whh_t, precision=hp) + bias)
            outs.append(h)
        seq = jnp.stack(outs, axis=0)
    return jnp.dot(h, params["fc_w_t"], precision=hp) + params["fc_b"]


# ---------------------------------- main --------------------------------------

if __name__ == "__main__":
    B, input_size, T = 2, 16, 8
    hidden_size, num_layers, classes = 32, 4, 10

    key = jax.random.PRNGKey(0)
    kx, kp = jax.random.split(key)
    x = jax.random.normal(kx, (B, input_size, T), dtype=jnp.float32)
    params = make_params(kp, input_size, classes, hidden_size, num_layers, B)

    fwd = jax.jit(rnn_forward, static_argnums=(2,))
    out = jax.block_until_ready(fwd(x, params, num_layers))

    assert out.shape == (B, classes), out.shape
    assert bool(jnp.all(jnp.isfinite(out)))

    ref = rnn_forward_reference(x, params, num_layers)
    assert bool(jnp.allclose(out, ref, rtol=1e-3, atol=1e-3)), (
        "mismatch vs pure-JAX reference")

    print("KERNEL_OK")
</pallas_src>

<mosaic_0001>
module attributes {stable_mosaic.version = 11 : i64} {
  func.func @kernel(%arg0: memref<16x16xf32, #tpu.memory_space<vmem>>, %arg1: memref<16x32xf32, #tpu.memory_space<vmem>>, %arg2: memref<32x32xf32, #tpu.memory_space<vmem>>, %arg3: memref<1x32xf32, #tpu.memory_space<vmem>>, %arg4: memref<32x32xf32, #tpu.memory_space<vmem>>, %arg5: memref<32x32xf32, #tpu.memory_space<vmem>>, %arg6: memref<1x32xf32, #tpu.memory_space<vmem>>, %arg7: memref<32x32xf32, #tpu.memory_space<vmem>>, %arg8: memref<32x32xf32, #tpu.memory_space<vmem>>, %arg9: memref<1x32xf32, #tpu.memory_space<vmem>>, %arg10: memref<32x32xf32, #tpu.memory_space<vmem>>, %arg11: memref<32x32xf32, #tpu.memory_space<vmem>>, %arg12: memref<1x32xf32, #tpu.memory_space<vmem>>, %arg13: memref<4x2x32xf32, #tpu.memory_space<vmem>>, %arg14: memref<32x10xf32, #tpu.memory_space<vmem>>, %arg15: memref<1x10xf32, #tpu.memory_space<vmem>>, %arg16: memref<2x10xf32, #tpu.memory_space<vmem>>, %arg17: memref<16x32xf32, #tpu.memory_space<vmem>>, %arg18: memref<16x32xf32, #tpu.memory_space<vmem>>) attributes {dimension_semantics = [], scalar_prefetch = 0 : i64, scratch_operands = 2 : i64, tpu.core_type = #tpu.core_type<tc>} {
    %c0 = arith.constant 0 : index
    %c0_0 = arith.constant 0 : index
    %0 = vector.load %arg1[%c0, %c0_0] : memref<16x32xf32, #tpu.memory_space<vmem>>, vector<16x32xf32>
    %c0_1 = arith.constant 0 : index
    %c0_2 = arith.constant 0 : index
    %1 = vector.load %arg2[%c0_1, %c0_2] : memref<32x32xf32, #tpu.memory_space<vmem>>, vector<32x32xf32>
    %c0_3 = arith.constant 0 : index
    %c0_4 = arith.constant 0 : index
    %2 = vector.load %arg3[%c0_3, %c0_4] : memref<1x32xf32, #tpu.memory_space<vmem>>, vector<1x32xf32>
    %c0_5 = arith.constant 0 : index
    %c0_6 = arith.constant 0 : index
    %3 = vector.load %arg0[%c0_5, %c0_6] : memref<16x16xf32, #tpu.memory_space<vmem>>, vector<16x16xf32>
    %cst = arith.constant dense<0.000000e+00> : vector<16x32xf32>
    %4 = tpu.matmul %3, %0, %cst {dimension_numbers = #tpu.dot_dimension_numbers<[1], [0], [0], [1], [0, 0, 1, 1], [], []>} : vector<16x16xf32>, vector<16x32xf32>, vector<16x32xf32> -> vector<16x32xf32>
    %5 = vector.broadcast %2 : vector<1x32xf32> to vector<16x32xf32>
    %6 = arith.addf %4, %5 : vector<16x32xf32>
    %c0_7 = arith.constant 0 : index
    %c0_8 = arith.constant 0 : index
    %7 = vector.load %arg17[%c0_7, %c0_8] : memref<16x32xf32, #tpu.memory_space<vmem>>, vector<16x32xf32>
    tpu.vector_store %arg17[%c0_7, %c0_8], %6 {strides = array<i32>} : memref<16x32xf32, #tpu.memory_space<vmem>>, vector<16x32xf32>,
    %c0_9 = arith.constant 0 : index
    %c0_10 = arith.constant 0 : index
    %c0_11 = arith.constant 0 : index
    %8 = vector.load %arg13[%c0_9, %c0_10, %c0_11] : memref<4x2x32xf32, #tpu.memory_space<vmem>>, vector<1x2x32xf32>
    %9 = vector.shape_cast %8 : vector<1x2x32xf32> to vector<2x32xf32>
    %c0_12 = arith.constant 0 : index
    %c0_13 = arith.constant 0 : index
    %10 = vector.load %arg17[%c0_12, %c0_13] : memref<16x32xf32, #tpu.memory_space<vmem>>, vector<2x32xf32>
    %cst_14 = arith.constant dense<0.000000e+00> : vector<2x32xf32>
    %11 = tpu.matmul %9, %1, %cst_14 {dimension_numbers = #tpu.dot_dimension_numbers<[1], [0], [0], [1], [0, 0, 1, 1], [], []>} : vector<2x32xf32>, vector<32x32xf32>, vector<2x32xf32> -> vector<2x32xf32>
    %12 = arith.addf %10, %11 : vector<2x32xf32>
    %13 = math.tanh %12 : vector<2x32xf32>
    %c0_15 = arith.constant 0 : index
    %c0_16 = arith.constant 0 : index
    %14 = vector.load %arg18[%c0_15, %c0_16] : memref<16x32xf32, #tpu.memory_space<vmem>>, vector<2x32xf32>
    tpu.vector_store %arg18[%c0_15, %c0_16], %13 {strides = array<i32>} : memref<16x32xf32, #tpu.memory_space<vmem>>, vector<2x32xf32>,
    %c2 = arith.constant 2 : index
    %c0_17 = arith.constant 0 : index
    %15 = vector.load %arg17[%c2, %c0_17] : memref<16x32xf32, #tpu.memory_space<vmem>>, vector<2x32xf32>
    %cst_18 = arith.constant dense<0.000000e+00> : vector<2x32xf32>
    %16 = tpu.matmul %13, %1, %cst_18 {dimension_numbers = #tpu.dot_dimension_numbers<[1], [0], [0], [1], [0, 0, 1, 1], [], []>} : vector<2x32xf32>, vector<32x32xf32>, vector<2x32xf32> -> vector<2x32xf32>
    %17 = arith.addf %15, %16 : vector<2x32xf32>
    %18 = math.tanh %17 : vector<2x32xf32>
    %c2_19 = arith.constant 2 : index
    %c0_20 = arith.constant 0 : index
    %19 = vector.load %arg18[%c2_19, %c0_20] : memref<16x32xf32, #tpu.memory_space<vmem>>, vector<2x32xf32>
    tpu.vector_store %arg18[%c2_19, %c0_20], %18 {strides = array<i32>} : memref<16x32xf32, #tpu.memory_space<vmem>>, vector<2x32xf32>,
    %c4 = arith.constant 4 : index
    %c0_21 = arith.constant 0 : index
    %20 = vector.load %arg17[%c4, %c0_21] : memref<16x32xf32, #tpu.memory_space<vmem>>, vector<2x32xf32>
    %cst_22 = arith.constant dense<0.000000e+00> : vector<2x32xf32>
    %21 = tpu.matmul %18, %1, %cst_22 {dimension_numbers = #tpu.dot_dimension_numbers<[1], [0], [0], [1], [0, 0, 1, 1], [], []>} : vector<2x32xf32>, vector<32x32xf32>, vector<2x32xf32> -> vector<2x32xf32>
    %22 = arith.addf %20, %21 : vector<2x32xf32>
    %23 = math.tanh %22 : vector<2x32xf32>
    %c4_23 = arith.constant 4 : index
    %c0_24 = arith.constant 0 : index
    %24 = vector.load %arg18[%c4_23, %c0_24] : memref<16x32xf32, #tpu.memory_space<vmem>>, vector<2x32xf32>
    tpu.vector_store %arg18[%c4_23, %c0_24], %23 {strides = array<i32>} : memref<16x32xf32, #tpu.memory_space<vmem>>, vector<2x32xf32>,
    %c6 = arith.constant 6 : index
    %c0_25 = arith.constant 0 : index
    %25 = vector.load %arg17[%c6, %c0_25] : memref<16x32xf32, #tpu.memory_space<vmem>>, vector<2x32xf32>
    %cst_26 = arith.constant dense<0.000000e+00> : vector<2x32xf32>
    %26 = tpu.matmul %23, %1, %cst_26 {dimension_numbers = #tpu.dot_dimension_numbers<[1], [0], [0], [1], [0, 0, 1, 1], [], []>} : vector<2x32xf32>, vector<32x32xf32>, vector<2x32xf32> -> vector<2x32xf32>
    %27 = arith.addf %25, %26 : vector<2x32xf32>
    %28 = math.tanh %27 : vector<2x32xf32>
    %c6_27 = arith.constant 6 : index
    %c0_28 = arith.constant 0 : index
    %29 = vector.load %arg18[%c6_27, %c0_28] : memref<16x32xf32, #tpu.memory_space<vmem>>, vector<2x32xf32>
    tpu.vector_store %arg18[%c6_27, %c0_28], %28 {strides = array<i32>} : memref<16x32xf32, #tpu.memory_space<vmem>>, vector<2x32xf32>,
    %c8 = arith.constant 8 : index
    %c0_29 = arith.constant 0 : index
    %30 = vector.load %arg17[%c8, %c0_29] : memref<16x32xf32, #tpu.memory_space<vmem>>, vector<2x32xf32>
    %cst_30 = arith.constant dense<0.000000e+00> : vector<2x32xf32>
    %31 = tpu.matmul %28, %1, %cst_30 {dimension_numbers = #tpu.dot_dimension_numbers<[1], [0], [0], [1], [0, 0, 1, 1], [], []>} : vector<2x32xf32>, vector<32x32xf32>, vector<2x32xf32> -> vector<2x32xf32>
    %32 = arith.addf %30, %31 : vector<2x32xf32>
    %33 = math.tanh %32 : vector<2x32xf32>
    %c8_31 = arith.constant 8 : index
    %c0_32 = arith.constant 0 : index
    %34 = vector.load %arg18[%c8_31, %c0_32] : memref<16x32xf32, #tpu.memory_space<vmem>>, vector<2x32xf32>
    tpu.vector_store %arg18[%c8_31, %c0_32], %33 {strides = array<i32>} : memref<16x32xf32, #tpu.memory_space<vmem>>, vector<2x32xf32>,
    %c10 = arith.constant 10 : index
    %c0_33 = arith.constant 0 : index
    %35 = vector.load %arg17[%c10, %c0_33] : memref<16x32xf32, #tpu.memory_space<vmem>>, vector<2x32xf32>
    %cst_34 = arith.constant dense<0.000000e+00> : vector<2x32xf32>
    %36 = tpu.matmul %33, %1, %cst_34 {dimension_numbers = #tpu.dot_dimension_numbers<[1], [0], [0], [1], [0, 0, 1, 1], [], []>} : vector<2x32xf32>, vector<32x32xf32>, vector<2x32xf32> -> vector<2x32xf32>
    %37 = arith.addf %35, %36 : vector<2x32xf32>
    %38 = math.tanh %37 : vector<2x32xf32>
    %c10_35 = arith.constant 10 : index
    %c0_36 = arith.constant 0 : index
    %39 = vector.load %arg18[%c10_35, %c0_36] : memref<16x32xf32, #tpu.memory_space<vmem>>, vector<2x32xf32>
    tpu.vector_store %arg18[%c10_35, %c0_36], %38 {strides = array<i32>} : memref<16x32xf32, #tpu.memory_space<vmem>>, vector<2x32xf32>,
    %c12 = arith.constant 12 : index
    %c0_37 = arith.constant 0 : index
    %40 = vector.load %arg17[%c12, %c0_37] : memref<16x32xf32, #tpu.memory_space<vmem>>, vector<2x32xf32>
    %cst_38 = arith.constant dense<0.000000e+00> : vector<2x32xf32>
    %41 = tpu.matmul %38, %1, %cst_38 {dimension_numbers = #tpu.dot_dimension_numbers<[1], [0], [0], [1], [0, 0, 1, 1], [], []>} : vector<2x32xf32>, vector<32x32xf32>, vector<2x32xf32> -> vector<2x32xf32>
    %42 = arith.addf %40, %41 : vector<2x32xf32>
    %43 = math.tanh %42 : vector<2x32xf32>
    %c12_39 = arith.constant 12 : index
    %c0_40 = arith.constant 0 : index
    %44 = vector.load %arg18[%c12_39, %c0_40] : memref<16x32xf32, #tpu.memory_space<vmem>>, vector<2x32xf32>
    tpu.vector_store %arg18[%c12_39, %c0_40], %43 {strides = array<i32>} : memref<16x32xf32, #tpu.memory_space<vmem>>, vector<2x32xf32>,
    %c14 = arith.constant 14 : index
    %c0_41 = arith.constant 0 : index
    %45 = vector.load %arg17[%c14, %c0_41] : memref<16x32xf32, #tpu.memory_space<vmem>>, vector<2x32xf32>
    %cst_42 = arith.constant dense<0.000000e+00> : vector<2x32xf32>
    %46 = tpu.matmul %43, %1, %cst_42 {dimension_numbers = #tpu.dot_dimension_numbers<[1], [0], [0], [1], [0, 0, 1, 1], [], []>} : vector<2x32xf32>, vector<32x32xf32>, vector<2x32xf32> -> vector<2x32xf32>
    %47 = arith.addf %45, %46 : vector<2x32xf32>
    %48 = math.tanh %47 : vector<2x32xf32>
    %c14_43 = arith.constant 14 : index
    %c0_44 = arith.constant 0 : index
    %49 = vector.load %arg18[%c14_43, %c0_44] : memref<16x32xf32, #tpu.memory_space<vmem>>, vector<2x32xf32>
    tpu.vector_store %arg18[%c14_43, %c0_44], %48 {strides = array<i32>} : memref<16x32xf32, #tpu.memory_space<vmem>>, vector<2x32xf32>,
    %c0_45 = arith.constant 0 : index
    %c0_46 = arith.constant 0 : index
    %50 = vector.load %arg4[%c0_45, %c0_46] : memref<32x32xf32, #tpu.memory_space<vmem>>, vector<32x32xf32>
    %c0_47 = arith.constant 0 : index
    %c0_48 = arith.constant 0 : index
    %51 = vector.load %arg5[%c0_47, %c0_48] : memref<32x32xf32, #tpu.memory_space<vmem>>, vector<32x32xf32>
    %c0_49 = arith.constant 0 : index
    %c0_50 = arith.constant 0 : index
    %52 = vector.load %arg6[%c0_49, %c0_50] : memref<1x32xf32, #tpu.memory_space<vmem>>, vector<1x32xf32>
    %c0_51 = arith.constant 0 : index
    %c0_52 = arith.constant 0 : index
    %53 = vector.load %arg18[%c0_51, %c0_52] : memref<16x32xf32, #tpu.memory_space<vmem>>, vector<16x32xf32>
    %cst_53 = arith.constant dense<0.000000e+00> : vector<16x32xf32>
    %54 = tpu.matmul %53, %50, %cst_53 {dimension_numbers = #tpu.dot_dimension_numbers<[1], [0], [0], [1], [0, 0, 1, 1], [], []>} : vector<16x32xf32>, vector<32x32xf32>, vector<16x32xf32> -> vector<16x32xf32>
    %55 = vector.broadcast %52 : vector<1x32xf32> to vector<16x32xf32>
    %56 = arith.addf %54, %55 : vector<16x32xf32>
    %c0_54 = arith.constant 0 : index
    %c0_55 = arith.constant 0 : index
    %57 = vector.load %arg17[%c0_54, %c0_55] : memref<16x32xf32, #tpu.memory_space<vmem>>, vector<16x32xf32>
    tpu.vector_store %arg17[%c0_54, %c0_55], %56 {strides = array<i32>} : memref<16x32xf32, #tpu.memory_space<vmem>>, vector<16x32xf32>,
    %c1 = arith.constant 1 : index
    %c0_56 = arith.constant 0 : index
    %c0_57 = arith.constant 0 : index
    %58 = vector.load %arg13[%c1, %c0_56, %c0_57] : memref<4x2x32xf32, #tpu.memory_space<vmem>>, vector<1x2x32xf32>
    %59 = vector.shape_cast %58 : vector<1x2x32xf32> to vector<2x32xf32>
    %c0_58 = arith.constant 0 : index
    %c0_59 = arith.constant 0 : index
    %60 = vector.load %arg17[%c0_58, %c0_59] : memref<16x32xf32, #tpu.memory_space<vmem>>, vector<2x32xf32>
    %cst_60 = arith.constant dense<0.000000e+00> : vector<2x32xf32>
    %61 = tpu.matmul %59, %51, %cst_60 {dimension_numbers = #tpu.dot_dimension_numbers<[1], [0], [0], [1], [0, 0, 1, 1], [], []>} : vector<2x32xf32>, vector<32x32xf32>, vector<2x32xf32> -> vector<2x32xf32>
    %62 = arith.addf %60, %61 : vector<2x32xf32>
    %63 = math.tanh %62 : vector<2x32xf32>
    %c0_61 = arith.constant 0 : index
    %c0_62 = arith.constant 0 : index
    %64 = vector.load %arg18[%c0_61, %c0_62] : memref<16x32xf32, #tpu.memory_space<vmem>>, vector<2x32xf32>
    tpu.vector_store %arg18[%c0_61, %c0_62], %63 {strides = array<i32>} : memref<16x32xf32, #tpu.memory_space<vmem>>, vector<2x32xf32>,
    %c2_63 = arith.constant 2 : index
    %c0_64 = arith.constant 0 : index
    %65 = vector.load %arg17[%c2_63, %c0_64] : memref<16x32xf32, #tpu.memory_space<vmem>>, vector<2x32xf32>
    %cst_65 = arith.constant dense<0.000000e+00> : vector<2x32xf32>
    %66 = tpu.matmul %63, %51, %cst_65 {dimension_numbers = #tpu.dot_dimension_numbers<[1], [0], [0], [1], [0, 0, 1, 1], [], []>} : vector<2x32xf32>, vector<32x32xf32>, vector<2x32xf32> -> vector<2x32xf32>
    %67 = arith.addf %65, %66 : vector<2x32xf32>
    %68 = math.tanh %67 : vector<2x32xf32>
    %c2_66 = arith.constant 2 : index
    %c0_67 = arith.constant 0 : index
    %69 = vector.load %arg18[%c2_66, %c0_67] : memref<16x32xf32, #tpu.memory_space<vmem>>, vector<2x32xf32>
    tpu.vector_store %arg18[%c2_66, %c0_67], %68 {strides = array<i32>} : memref<16x32xf32, #tpu.memory_space<vmem>>, vector<2x32xf32>,
    %c4_68 = arith.constant 4 : index
    %c0_69 = arith.constant 0 : index
    %70 = vector.load %arg17[%c4_68, %c0_69] : memref<16x32xf32, #tpu.memory_space<vmem>>, vector<2x32xf32>
    %cst_70 = arith.constant dense<0.000000e+00> : vector<2x32xf32>
    %71 = tpu.matmul %68, %51, %cst_70 {dimension_numbers = #tpu.dot_dimension_numbers<[1], [0], [0], [1], [0, 0, 1, 1], [], []>} : vector<2x32xf32>, vector<32x32xf32>, vector<2x32xf32> -> vector<2x32xf32>
    %72 = arith.addf %70, %71 : vector<2x32xf32>
    %73 = math.tanh %72 : vector<2x32xf32>
    %c4_71 = arith.constant 4 : index
    %c0_72 = arith.constant 0 : index
    %74 = vector.load %arg18[%c4_71, %c0_72] : memref<16x32xf32, #tpu.memory_space<vmem>>, vector<2x32xf32>
    tpu.vector_store %arg18[%c4_71, %c0_72], %73 {strides = array<i32>} : memref<16x32xf32, #tpu.memory_space<vmem>>, vector<2x32xf32>,
    %c6_73 = arith.constant 6 : index
    %c0_74 = arith.constant 0 : index
    %75 = vector.load %arg17[%c6_73, %c0_74] : memref<16x32xf32, #tpu.memory_space<vmem>>, vector<2x32xf32>
    %cst_75 = arith.constant dense<0.000000e+00> : vector<2x32xf32>
    %76 = tpu.matmul %73, %51, %cst_75 {dimension_numbers = #tpu.dot_dimension_numbers<[1], [0], [0], [1], [0, 0, 1, 1], [], []>} : vector<2x32xf32>, vector<32x32xf32>, vector<2x32xf32> -> vector<2x32xf32>
    %77 = arith.addf %75, %76 : vector<2x32xf32>
    %78 = math.tanh %77 : vector<2x32xf32>
    %c6_76 = arith.constant 6 : index
    %c0_77 = arith.constant 0 : index
    %79 = vector.load %arg18[%c6_76, %c0_77] : memref<16x32xf32, #tpu.memory_space<vmem>>, vector<2x32xf32>
    tpu.vector_store %arg18[%c6_76, %c0_77], %78 {strides = array<i32>} : memref<16x32xf32, #tpu.memory_space<vmem>>, vector<2x32xf32>,
    %c8_78 = arith.constant 8 : index
    %c0_79 = arith.constant 0 : index
    %80 = vector.load %arg17[%c8_78, %c0_79] : memref<16x32xf32, #tpu.memory_space<vmem>>, vector<2x32xf32>
    %cst_80 = arith.constant dense<0.000000e+00> : vector<2x32xf32>
    %81 = tpu.matmul %78, %51, %cst_80 {dimension_numbers = #tpu.dot_dimension_numbers<[1], [0], [0], [1], [0, 0, 1, 1], [], []>} : vector<2x32xf32>, vector<32x32xf32>, vector<2x32xf32> -> vector<2x32xf32>
    %82 = arith.addf %80, %81 : vector<2x32xf32>
    %83 = math.tanh %82 : vector<2x32xf32>
    %c8_81 = arith.constant 8 : index
    %c0_82 = arith.constant 0 : index
    %84 = vector.load %arg18[%c8_81, %c0_82] : memref<16x32xf32, #tpu.memory_space<vmem>>, vector<2x32xf32>
    tpu.vector_store %arg18[%c8_81, %c0_82], %83 {strides = array<i32>} : memref<16x32xf32, #tpu.memory_space<vmem>>, vector<2x32xf32>,
    %c10_83 = arith.constant 10 : index
    %c0_84 = arith.constant 0 : index
    %85 = vector.load %arg17[%c10_83, %c0_84] : memref<16x32xf32, #tpu.memory_space<vmem>>, vector<2x32xf32>
    %cst_85 = arith.constant dense<0.000000e+00> : vector<2x32xf32>
    %86 = tpu.matmul %83, %51, %cst_85 {dimension_numbers = #tpu.dot_dimension_numbers<[1], [0], [0], [1], [0, 0, 1, 1], [], []>} : vector<2x32xf32>, vector<32x32xf32>, vector<2x32xf32> -> vector<2x32xf32>
    %87 = arith.addf %85, %86 : vector<2x32xf32>
    %88 = math.tanh %87 : vector<2x32xf32>
    %c10_86 = arith.constant 10 : index
    %c0_87 = arith.constant 0 : index
    %89 = vector.load %arg18[%c10_86, %c0_87] : memref<16x32xf32, #tpu.memory_space<vmem>>, vector<2x32xf32>
    tpu.vector_store %arg18[%c10_86, %c0_87], %88 {strides = array<i32>} : memref<16x32xf32, #tpu.memory_space<vmem>>, vector<2x32xf32>,
    %c12_88 = arith.constant 12 : index
    %c0_89 = arith.constant 0 : index
    %90 = vector.load %arg17[%c12_88, %c0_89] : memref<16x32xf32, #tpu.memory_space<vmem>>, vector<2x32xf32>
    %cst_90 = arith.constant dense<0.000000e+00> : vector<2x32xf32>
    %91 = tpu.matmul %88, %51, %cst_90 {dimension_numbers = #tpu.dot_dimension_numbers<[1], [0], [0], [1], [0, 0, 1, 1], [], []>} : vector<2x32xf32>, vector<32x32xf32>, vector<2x32xf32> -> vector<2x32xf32>
    %92 = arith.addf %90, %91 : vector<2x32xf32>
    %93 = math.tanh %92 : vector<2x32xf32>
    %c12_91 = arith.constant 12 : index
    %c0_92 = arith.constant 0 : index
    %94 = vector.load %arg18[%c12_91, %c0_92] : memref<16x32xf32, #tpu.memory_space<vmem>>, vector<2x32xf32>
    tpu.vector_store %arg18[%c12_91, %c0_92], %93 {strides = array<i32>} : memref<16x32xf32, #tpu.memory_space<vmem>>, vector<2x32xf32>,
    %c14_93 = arith.constant 14 : index
    %c0_94 = arith.constant 0 : index
    %95 = vector.load %arg17[%c14_93, %c0_94] : memref<16x32xf32, #tpu.memory_space<vmem>>, vector<2x32xf32>
    %cst_95 = arith.constant dense<0.000000e+00> : vector<2x32xf32>
    %96 = tpu.matmul %93, %51, %cst_95 {dimension_numbers = #tpu.dot_dimension_numbers<[1], [0], [0], [1], [0, 0, 1, 1], [], []>} : vector<2x32xf32>, vector<32x32xf32>, vector<2x32xf32> -> vector<2x32xf32>
    %97 = arith.addf %95, %96 : vector<2x32xf32>
    %98 = math.tanh %97 : vector<2x32xf32>
    %c14_96 = arith.constant 14 : index
    %c0_97 = arith.constant 0 : index
    %99 = vector.load %arg18[%c14_96, %c0_97] : memref<16x32xf32, #tpu.memory_space<vmem>>, vector<2x32xf32>
    tpu.vector_store %arg18[%c14_96, %c0_97], %98 {strides = array<i32>} : memref<16x32xf32, #tpu.memory_space<vmem>>, vector<2x32xf32>,
    %c0_98 = arith.constant 0 : index
    %c0_99 = arith.constant 0 : index
    %100 = vector.load %arg7[%c0_98, %c0_99] : memref<32x32xf32, #tpu.memory_space<vmem>>, vector<32x32xf32>
    %c0_100 = arith.constant 0 : index
    %c0_101 = arith.constant 0 : index
    %101 = vector.load %arg8[%c0_100, %c0_101] : memref<32x32xf32, #tpu.memory_space<vmem>>, vector<32x32xf32>
    %c0_102 = arith.constant 0 : index
    %c0_103 = arith.constant 0 : index
    %102 = vector.load %arg9[%c0_102, %c0_103] : memref<1x32xf32, #tpu.memory_space<vmem>>, vector<1x32xf32>
    %c0_104 = arith.constant 0 : index
    %c0_105 = arith.constant 0 : index
    %103 = vector.load %arg18[%c0_104, %c0_105] : memref<16x32xf32, #tpu.memory_space<vmem>>, vector<16x32xf32>
    %cst_106 = arith.constant dense<0.000000e+00> : vector<16x32xf32>
    %104 = tpu.matmul %103, %100, %cst_106 {dimension_numbers = #tpu.dot_dimension_numbers<[1], [0], [0], [1], [0, 0, 1, 1], [], []>} : vector<16x32xf32>, vector<32x32xf32>, vector<16x32xf32> -> vector<16x32xf32>
    %105 = vector.broadcast %102 : vector<1x32xf32> to vector<16x32xf32>
    %106 = arith.addf %104, %105 : vector<16x32xf32>
    %c0_107 = arith.constant 0 : index
    %c0_108 = arith.constant 0 : index
    %107 = vector.load %arg17[%c0_107, %c0_108] : memref<16x32xf32, #tpu.memory_space<vmem>>, vector<16x32xf32>
    tpu.vector_store %arg17[%c0_107, %c0_108], %106 {strides = array<i32>} : memref<16x32xf32, #tpu.memory_space<vmem>>, vector<16x32xf32>,
    %c2_109 = arith.constant 2 : index
    %c0_110 = arith.constant 0 : index
    %c0_111 = arith.constant 0 : index
    %108 = vector.load %arg13[%c2_109, %c0_110, %c0_111] : memref<4x2x32xf32, #tpu.memory_space<vmem>>, vector<1x2x32xf32>
    %109 = vector.shape_cast %108 : vector<1x2x32xf32> to vector<2x32xf32>
    %c0_112 = arith.constant 0 : index
    %c0_113 = arith.constant 0 : index
    %110 = vector.load %arg17[%c0_112, %c0_113] : memref<16x32xf32, #tpu.memory_space<vmem>>, vector<2x32xf32>
    %cst_114 = arith.constant dense<0.000000e+00> : vector<2x32xf32>
    %111 = tpu.matmul %109, %101, %cst_114 {dimension_numbers = #tpu.dot_dimension_numbers<[1], [0], [0], [1], [0, 0, 1, 1], [], []>} : vector<2x32xf32>, vector<32x32xf32>, vector<2x32xf32> -> vector<2x32xf32>
    %112 = arith.addf %110, %111 : vector<2x32xf32>
    %113 = math.tanh %112 : vector<2x32xf32>
    %c0_115 = arith.constant 0 : index
    %c0_116 = arith.constant 0 : index
    %114 = vector.load %arg18[%c0_115, %c0_116] : memref<16x32xf32, #tpu.memory_space<vmem>>, vector<2x32xf32>
    tpu.vector_store %arg18[%c0_115, %c0_116], %113 {strides = array<i32>} : memref<16x32xf32, #tpu.memory_space<vmem>>, vector<2x32xf32>,
    %c2_117 = arith.constant 2 : index
    %c0_118 = arith.constant 0 : index
    %115 = vector.load %arg17[%c2_117, %c0_118] : memref<16x32xf32, #tpu.memory_space<vmem>>, vector<2x32xf32>
    %cst_119 = arith.constant dense<0.000000e+00> : vector<2x32xf32>
    %116 = tpu.matmul %113, %101, %cst_119 {dimension_numbers = #tpu.dot_dimension_numbers<[1], [0], [0], [1], [0, 0, 1, 1], [], []>} : vector<2x32xf32>, vector<32x32xf32>, vector<2x32xf32> -> vector<2x32xf32>
    %117 = arith.addf %115, %116 : vector<2x32xf32>
    %118 = math.tanh %117 : vector<2x32xf32>
    %c2_120 = arith.constant 2 : index
    %c0_121 = arith.constant 0 : index
    %119 = vector.load %arg18[%c2_120, %c0_121] : memref<16x32xf32, #tpu.memory_space<vmem>>, vector<2x32xf32>
    tpu.vector_store %arg18[%c2_120, %c0_121], %118 {strides = array<i32>} : memref<16x32xf32, #tpu.memory_space<vmem>>, vector<2x32xf32>,
    %c4_122 = arith.constant 4 : index
    %c0_123 = arith.constant 0 : index
    %120 = vector.load %arg17[%c4_122, %c0_123] : memref<16x32xf32, #tpu.memory_space<vmem>>, vector<2x32xf32>
    %cst_124 = arith.constant dense<0.000000e+00> : vector<2x32xf32>
    %121 = tpu.matmul %118, %101, %cst_124 {dimension_numbers = #tpu.dot_dimension_numbers<[1], [0], [0], [1], [0, 0, 1, 1], [], []>} : vector<2x32xf32>, vector<32x32xf32>, vector<2x32xf32> -> vector<2x32xf32>
    %122 = arith.addf %120, %121 : vector<2x32xf32>
    %123 = math.tanh %122 : vector<2x32xf32>
    %c4_125 = arith.constant 4 : index
    %c0_126 = arith.constant 0 : index
    %124 = vector.load %arg18[%c4_125, %c0_126] : memref<16x32xf32, #tpu.memory_space<vmem>>, vector<2x32xf32>
    tpu.vector_store %arg18[%c4_125, %c0_126], %123 {strides = array<i32>} : memref<16x32xf32, #tpu.memory_space<vmem>>, vector<2x32xf32>,
    %c6_127 = arith.constant 6 : index
    %c0_128 = arith.constant 0 : index
    %125 = vector.load %arg17[%c6_127, %c0_128] : memref<16x32xf32, #tpu.memory_space<vmem>>, vector<2x32xf32>
    %cst_129 = arith.constant dense<0.000000e+00> : vector<2x32xf32>
    %126 = tpu.matmul %123, %101, %cst_129 {dimension_numbers = #tpu.dot_dimension_numbers<[1], [0], [0], [1], [0, 0, 1, 1], [], []>} : vector<2x32xf32>, vector<32x32xf32>, vector<2x32xf32> -> vector<2x32xf32>
    %127 = arith.addf %125, %126 : vector<2x32xf32>
    %128 = math.tanh %127 : vector<2x32xf32>
    %c6_130 = arith.constant 6 : index
    %c0_131 = arith.constant 0 : index
    %129 = vector.load %arg18[%c6_130, %c0_131] : memref<16x32xf32, #tpu.memory_space<vmem>>, vector<2x32xf32>
    tpu.vector_store %arg18[%c6_130, %c0_131], %128 {strides = array<i32>} : memref<16x32xf32, #tpu.memory_space<vmem>>, vector<2x32xf32>,
    %c8_132 = arith.constant 8 : index
    %c0_133 = arith.constant 0 : index
    %130 = vector.load %arg17[%c8_132, %c0_133] : memref<16x32xf32, #tpu.memory_space<vmem>>, vector<2x32xf32>
    %cst_134 = arith.constant dense<0.000000e+00> : vector<2x32xf32>
    %131 = tpu.matmul %128, %101, %cst_134 {dimension_numbers = #tpu.dot_dimension_numbers<[1], [0], [0], [1], [0, 0, 1, 1], [], []>} : vector<2x32xf32>, vector<32x32xf32>, vector<2x32xf32> -> vector<2x32xf32>
    %132 = arith.addf %130, %131 : vector<2x32xf32>
    %133 = math.tanh %132 : vector<2x32xf32>
    %c8_135 = arith.constant 8 : index
    %c0_136 = arith.constant 0 : index
    %134 = vector.load %arg18[%c8_135, %c0_136] : memref<16x32xf32, #tpu.memory_space<vmem>>, vector<2x32xf32>
    tpu.vector_store %arg18[%c8_135, %c0_136], %133 {strides = array<i32>} : memref<16x32xf32, #tpu.memory_space<vmem>>, vector<2x32xf32>,
    %c10_137 = arith.constant 10 : index
    %c0_138 = arith.constant 0 : index
    %135 = vector.load %arg17[%c10_137, %c0_138] : memref<16x32xf32, #tpu.memory_space<vmem>>, vector<2x32xf32>
    %cst_139 = arith.constant dense<0.000000e+00> : vector<2x32xf32>
    %136 = tpu.matmul %133, %101, %cst_139 {dimension_numbers = #tpu.dot_dimension_numbers<[1], [0], [0], [1], [0, 0, 1, 1], [], []>} : vector<2x32xf32>, vector<32x32xf32>, vector<2x32xf32> -> vector<2x32xf32>
    %137 = arith.addf %135, %136 : vector<2x32xf32>
    %138 = math.tanh %137 : vector<2x32xf32>
    %c10_140 = arith.constant 10 : index
    %c0_141 = arith.constant 0 : index
    %139 = vector.load %arg18[%c10_140, %c0_141] : memref<16x32xf32, #tpu.memory_space<vmem>>, vector<2x32xf32>
    tpu.vector_store %arg18[%c10_140, %c0_141], %138 {strides = array<i32>} : memref<16x32xf32, #tpu.memory_space<vmem>>, vector<2x32xf32>,
    %c12_142 = arith.constant 12 : index
    %c0_143 = arith.constant 0 : index
    %140 = vector.load %arg17[%c12_142, %c0_143] : memref<16x32xf32, #tpu.memory_space<vmem>>, vector<2x32xf32>
    %cst_144 = arith.constant dense<0.000000e+00> : vector<2x32xf32>
    %141 = tpu.matmul %138, %101, %cst_144 {dimension_numbers = #tpu.dot_dimension_numbers<[1], [0], [0], [1], [0, 0, 1, 1], [], []>} : vector<2x32xf32>, vector<32x32xf32>, vector<2x32xf32> -> vector<2x32xf32>
    %142 = arith.addf %140, %141 : vector<2x32xf32>
    %143 = math.tanh %142 : vector<2x32xf32>
    %c12_145 = arith.constant 12 : index
    %c0_146 = arith.constant 0 : index
    %144 = vector.load %arg18[%c12_145, %c0_146] : memref<16x32xf32, #tpu.memory_space<vmem>>, vector<2x32xf32>
    tpu.vector_store %arg18[%c12_145, %c0_146], %143 {strides = array<i32>} : memref<16x32xf32, #tpu.memory_space<vmem>>, vector<2x32xf32>,
    %c14_147 = arith.constant 14 : index
    %c0_148 = arith.constant 0 : index
    %145 = vector.load %arg17[%c14_147, %c0_148] : memref<16x32xf32, #tpu.memory_space<vmem>>, vector<2x32xf32>
    %cst_149 = arith.constant dense<0.000000e+00> : vector<2x32xf32>
    %146 = tpu.matmul %143, %101, %cst_149 {dimension_numbers = #tpu.dot_dimension_numbers<[1], [0], [0], [1], [0, 0, 1, 1], [], []>} : vector<2x32xf32>, vector<32x32xf32>, vector<2x32xf32> -> vector<2x32xf32>
    %147 = arith.addf %145, %146 : vector<2x32xf32>
    %148 = math.tanh %147 : vector<2x32xf32>
    %c14_150 = arith.constant 14 : index
    %c0_151 = arith.constant 0 : index
    %149 = vector.load %arg18[%c14_150, %c0_151] : memref<16x32xf32, #tpu.memory_space<vmem>>, vector<2x32xf32>
    tpu.vector_store %arg18[%c14_150, %c0_151], %148 {strides = array<i32>} : memref<16x32xf32, #tpu.memory_space<vmem>>, vector<2x32xf32>,
    %c0_152 = arith.constant 0 : index
    %c0_153 = arith.constant 0 : index
    %150 = vector.load %arg10[%c0_152, %c0_153] : memref<32x32xf32, #tpu.memory_space<vmem>>, vector<32x32xf32>
    %c0_154 = arith.constant 0 : index
    %c0_155 = arith.constant 0 : index
    %151 = vector.load %arg11[%c0_154, %c0_155] : memref<32x32xf32, #tpu.memory_space<vmem>>, vector<32x32xf32>
    %c0_156 = arith.constant 0 : index
    %c0_157 = arith.constant 0 : index
    %152 = vector.load %arg12[%c0_156, %c0_157] : memref<1x32xf32, #tpu.memory_space<vmem>>, vector<1x32xf32>
    %c0_158 = arith.constant 0 : index
    %c0_159 = arith.constant 0 : index
    %153 = vector.load %arg18[%c0_158, %c0_159] : memref<16x32xf32, #tpu.memory_space<vmem>>, vector<16x32xf32>
    %cst_160 = arith.constant dense<0.000000e+00> : vector<16x32xf32>
    %154 = tpu.matmul %153, %150, %cst_160 {dimension_numbers = #tpu.dot_dimension_numbers<[1], [0], [0], [1], [0, 0, 1, 1], [], []>} : vector<16x32xf32>, vector<32x32xf32>, vector<16x32xf32> -> vector<16x32xf32>
    %155 = vector.broadcast %152 : vector<1x32xf32> to vector<16x32xf32>
    %156 = arith.addf %154, %155 : vector<16x32xf32>
    %c0_161 = arith.constant 0 : index
    %c0_162 = arith.constant 0 : index
    %157 = vector.load %arg17[%c0_161, %c0_162] : memref<16x32xf32, #tpu.memory_space<vmem>>, vector<16x32xf32>
    tpu.vector_store %arg17[%c0_161, %c0_162], %156 {strides = array<i32>} : memref<16x32xf32, #tpu.memory_space<vmem>>, vector<16x32xf32>,
    %c3 = arith.constant 3 : index
    %c0_163 = arith.constant 0 : index
    %c0_164 = arith.constant 0 : index
    %158 = vector.load %arg13[%c3, %c0_163, %c0_164] : memref<4x2x32xf32, #tpu.memory_space<vmem>>, vector<1x2x32xf32>
    %159 = vector.shape_cast %158 : vector<1x2x32xf32> to vector<2x32xf32>
    %c0_165 = arith.constant 0 : index
    %c0_166 = arith.constant 0 : index
    %160 = vector.load %arg17[%c0_165, %c0_166] : memref<16x32xf32, #tpu.memory_space<vmem>>, vector<2x32xf32>
    %cst_167 = arith.constant dense<0.000000e+00> : vector<2x32xf32>
    %161 = tpu.matmul %159, %151, %cst_167 {dimension_numbers = #tpu.dot_dimension_numbers<[1], [0], [0], [1], [0, 0, 1, 1], [], []>} : vector<2x32xf32>, vector<32x32xf32>, vector<2x32xf32> -> vector<2x32xf32>
    %162 = arith.addf %160, %161 : vector<2x32xf32>
    %163 = math.tanh %162 : vector<2x32xf32>
    %c2_168 = arith.constant 2 : index
    %c0_169 = arith.constant 0 : index
    %164 = vector.load %arg17[%c2_168, %c0_169] : memref<16x32xf32, #tpu.memory_space<vmem>>, vector<2x32xf32>
    %cst_170 = arith.constant dense<0.000000e+00> : vector<2x32xf32>
    %165 = tpu.matmul %163, %151, %cst_170 {dimension_numbers = #tpu.dot_dimension_numbers<[1], [0], [0], [1], [0, 0, 1, 1], [], []>} : vector<2x32xf32>, vector<32x32xf32>, vector<2x32xf32> -> vector<2x32xf32>
    %166 = arith.addf %164, %165 : vector<2x32xf32>
    %167 = math.tanh %166 : vector<2x32xf32>
    %c4_171 = arith.constant 4 : index
    %c0_172 = arith.constant 0 : index
    %168 = vector.load %arg17[%c4_171, %c0_172] : memref<16x32xf32, #tpu.memory_space<vmem>>, vector<2x32xf32>
    %cst_173 = arith.constant dense<0.000000e+00> : vector<2x32xf32>
    %169 = tpu.matmul %167, %151, %cst_173 {dimension_numbers = #tpu.dot_dimension_numbers<[1], [0], [0], [1], [0, 0, 1, 1], [], []>} : vector<2x32xf32>, vector<32x32xf32>, vector<2x32xf32> -> vector<2x32xf32>
    %170 = arith.addf %168, %169 : vector<2x32xf32>
    %171 = math.tanh %170 : vector<2x32xf32>
    %c6_174 = arith.constant 6 : index
    %c0_175 = arith.constant 0 : index
    %172 = vector.load %arg17[%c6_174, %c0_175] : memref<16x32xf32, #tpu.memory_space<vmem>>, vector<2x32xf32>
    %cst_176 = arith.constant dense<0.000000e+00> : vector<2x32xf32>
    %173 = tpu.matmul %171, %151, %cst_176 {dimension_numbers = #tpu.dot_dimension_numbers<[1], [0], [0], [1], [0, 0, 1, 1], [], []>} : vector<2x32xf32>, vector<32x32xf32>, vector<2x32xf32> -> vector<2x32xf32>
    %174 = arith.addf %172, %173 : vector<2x32xf32>
    %175 = math.tanh %174 : vector<2x32xf32>
    %c8_177 = arith.constant 8 : index
    %c0_178 = arith.constant 0 : index
    %176 = vector.load %arg17[%c8_177, %c0_178] : memref<16x32xf32, #tpu.memory_space<vmem>>, vector<2x32xf32>
    %cst_179 = arith.constant dense<0.000000e+00> : vector<2x32xf32>
    %177 = tpu.matmul %175, %151, %cst_179 {dimension_numbers = #tpu.dot_dimension_numbers<[1], [0], [0], [1], [0, 0, 1, 1], [], []>} : vector<2x32xf32>, vector<32x32xf32>, vector<2x32xf32> -> vector<2x32xf32>
    %178 = arith.addf %176, %177 : vector<2x32xf32>
    %179 = math.tanh %178 : vector<2x32xf32>
    %c10_180 = arith.constant 10 : index
    %c0_181 = arith.constant 0 : index
    %180 = vector.load %arg17[%c10_180, %c0_181] : memref<16x32xf32, #tpu.memory_space<vmem>>, vector<2x32xf32>
    %cst_182 = arith.constant dense<0.000000e+00> : vector<2x32xf32>
    %181 = tpu.matmul %179, %151, %cst_182 {dimension_numbers = #tpu.dot_dimension_numbers<[1], [0], [0], [1], [0, 0, 1, 1], [], []>} : vector<2x32xf32>, vector<32x32xf32>, vector<2x32xf32> -> vector<2x32xf32>
    %182 = arith.addf %180, %181 : vector<2x32xf32>
    %183 = math.tanh %182 : vector<2x32xf32>
    %c12_183 = arith.constant 12 : index
    %c0_184 = arith.constant 0 : index
    %184 = vector.load %arg17[%c12_183, %c0_184] : memref<16x32xf32, #tpu.memory_space<vmem>>, vector<2x32xf32>
    %cst_185 = arith.constant dense<0.000000e+00> : vector<2x32xf32>
    %185 = tpu.matmul %183, %151, %cst_185 {dimension_numbers = #tpu.dot_dimension_numbers<[1], [0], [0], [1], [0, 0, 1, 1], [], []>} : vector<2x32xf32>, vector<32x32xf32>, vector<2x32xf32> -> vector<2x32xf32>
    %186 = arith.addf %184, %185 : vector<2x32xf32>
    %187 = math.tanh %186 : vector<2x32xf32>
    %c14_186 = arith.constant 14 : index
    %c0_187 = arith.constant 0 : index
    %188 = vector.load %arg17[%c14_186, %c0_187] : memref<16x32xf32, #tpu.memory_space<vmem>>, vector<2x32xf32>
    %cst_188 = arith.constant dense<0.000000e+00> : vector<2x32xf32>
    %189 = tpu.matmul %187, %151, %cst_188 {dimension_numbers = #tpu.dot_dimension_numbers<[1], [0], [0], [1], [0, 0, 1, 1], [], []>} : vector<2x32xf32>, vector<32x32xf32>, vector<2x32xf32> -> vector<2x32xf32>
    %190 = arith.addf %188, %189 : vector<2x32xf32>
    %191 = math.tanh %190 : vector<2x32xf32>
    %c0_189 = arith.constant 0 : index
    %c0_190 = arith.constant 0 : index
    %192 = vector.load %arg14[%c0_189, %c0_190] : memref<32x10xf32, #tpu.memory_space<vmem>>, vector<32x10xf32>
    %cst_191 = arith.constant dense<0.000000e+00> : vector<2x10xf32>
    %193 = tpu.matmul %191, %192, %cst_191 {dimension_numbers = #tpu.dot_dimension_numbers<[1], [0], [0], [1], [0, 0, 1, 1], [], []>} : vector<2x32xf32>, vector<32x10xf32>, vector<2x10xf32> -> vector<2x10xf32>
    %c0_192 = arith.constant 0 : index
    %c0_193 = arith.constant 0 : index
    %194 = vector.load %arg15[%c0_192, %c0_193] : memref<1x10xf32, #tpu.memory_space<vmem>>, vector<1x10xf32>
    %195 = vector.broadcast %194 : vector<1x10xf32> to vector<2x10xf32>
    %196 = arith.addf %193, %195 : vector<2x10xf32>
    %c0_194 = arith.constant 0 : index
    %c0_195 = arith.constant 0 : index
    %197 = vector.load %arg16[%c0_194, %c0_195] : memref<2x10xf32, #tpu.memory_space<vmem>>, vector<2x10xf32>
    tpu.vector_store %arg16[%c0_194, %c0_195], %196 {strides = array<i32>} : memref<2x10xf32, #tpu.memory_space<vmem>>, vector<2x10xf32>,
    return
  }
}

</mosaic_0001>

<bundles_post_ra>
// kernel: rnn_forward.1
= control target key start
LH: loop header
LB: loop body
LE: loop exit
PB: predicated region body
PF: predicated region fallthrough
CT: control target
= control target key end

     0   :  { %s2155_s0 = inlined_call_operand.vmem [shape: f32[16,16], index: 0, kind: input, shape index: {}]   ;;  %s2156_s1 = inlined_call_operand.hbm [shape: f32[16,32], index: 1, kind: input, shape index: {}]   ;;  %s2157_s2 = inlined_call_operand.vmem [shape: f32[32,32], index: 2, kind: input, shape index: {}]   ;;  %s2158_s3 = inlined_call_operand.hbm [shape: f32[1,32], index: 3, kind: input, shape index: {}]   ;;  %s2159_s4 = inlined_call_operand.vmem [shape: f32[32,32], index: 4, kind: input, shape index: {}]   ;;  %s2160_s5 = inlined_call_operand.hbm [shape: f32[32,32], index: 5, kind: input, shape index: {}]   ;;  %s2161_s6 = inlined_call_operand.hbm [shape: f32[1,32], index: 6, kind: input, shape index: {}]   ;;  %s2162_s7 = inlined_call_operand.hbm [shape: f32[32,32], index: 7, kind: input, shape index: {}]   ;;  %s2163_s8 = inlined_call_operand.hbm [shape: f32[32,32], index: 8, kind: input, shape index: {}]   ;;  %s2164_s9 = inlined_call_operand.hbm [shape: f32[1,32], index: 9, kind: input, shape index: {}]   ;;  %s2165_s10 = inlined_call_operand.hbm [shape: f32[32,32], index: 10, kind: input, shape index: {}]   ;;  %s2166_s11 = inlined_call_operand.hbm [shape: f32[32,32], index: 11, kind: input, shape index: {}]   ;;  %s2167_s12 = inlined_call_operand.hbm [shape: f32[1,32], index: 12, kind: input, shape index: {}]   ;;  %s2168_s13 = inlined_call_operand.vmem [shape: f32[4,2,32], index: 13, kind: input, shape index: {}]   ;;  %s2169_s14 = inlined_call_operand.vmem [shape: f32[32,10], index: 14, kind: input, shape index: {}]   ;;  %s2170_s15 = inlined_call_operand.hbm [shape: f32[1,10], index: 15, kind: input, shape index: {}]   ;;  %s2171_s16 = inlined_call_operand.hbm [shape: f32[2,10], index: 16, kind: output, shape index: {}]  }
   0x1   :  { %2173 = sst [smem:[#allocation30_spill]] %s2155_s0 }
   0x2   :  { %21 = vsyncpa [#allocation5], 0 }
   0x3   :  { %22 = vsyncpa [#allocation8], 0 }
   0x4   :  { %23 = vsyncpa [#allocation11], 0 }
   0x5   :  { %24 = vsyncpa [#allocation14], 0 }
   0x6   :  { %25 = vsyncpa [#allocation17], 0 }
   0x7   :  { %26 = vsyncpa [#allocation20], 0  ;;  %s50_s23 = sshll.u32 %s2158_s3, 4  ;;  %s51_s23 = int_to_ptr.hbm [resolvable:$true] %s50_s23 }
   0x8   :  { %27 = vsyncpa [#allocation6], 0  ;;  %s1743_s24 = smov [#allocation7]   ;;  %s76_s28 = sshll.u32 %s2161_s6, 4  ;;  %s77_s28 = int_to_ptr.hbm [resolvable:$true] %s76_s28 }
   0x9   :  { %s52_s25 = sshll.u32 %s1743_s24, 4  ;;  %s1744_s29 = smov [#allocation10]   ;;  %s53_s25 = int_to_ptr.vmem [resolvable:$true] %s52_s25 }
   0xa   :  { %55 = dma.hbm_to_vmem [thread:$0]  %s51_s23, 16, %s53_s25, [#allocation8]  }
   0xb   :  { %s78_s30 = sshll.u32 %s1744_s29, 4  ;;  %s99_s18 = sshll.u32 %s2163_s8, 4  ;;  %s79_s30 = int_to_ptr.vmem [resolvable:$true] %s78_s30  ;;  %s100_s18 = int_to_ptr.hbm [resolvable:$true] %s99_s18 }
   0xc   :  { %81 = dma.hbm_to_vmem [thread:$0]  %s77_s28, 16, %s79_s30, [#allocation11]  }
   0xd   :  { %s1745_s3 = smov [#allocation13]   ;;  %s123_s22 = sshll.u32 %s2165_s10, 4  ;;  %s124_s22 = int_to_ptr.hbm [resolvable:$true] %s123_s22 }
   0xe   :  { %s101_s19 = sshll.u32 %s1745_s3, 4  ;;  %s1746_s24 = smov 128   ;;  %s102_s19 = int_to_ptr.vmem [resolvable:$true] %s101_s19 }
   0xf   :  { %s1747_s6 = smov 8   ;;  %s1748_s23 = smov [#allocation16]  }
  0x10   :  { %107 = dma.hbm_to_vmem [thread:$0]  %s100_s18, 512, %s102_s19, [#allocation14], %s1746_s24, %s1746_s24, %s1747_s6  }
  0x11   :  { %s125_s25 = sshll.u32 %s1748_s23, 4  ;;  %s150_s8 = sshll.u32 %s2167_s12, 4  ;;  %s126_s25 = int_to_ptr.vmem [resolvable:$true] %s125_s25  ;;  %s151_s8 = int_to_ptr.hbm [resolvable:$true] %s150_s8 }
  0x12   :  { %131 = dma.hbm_to_vmem [thread:$0]  %s124_s22, 512, %s126_s25, [#allocation17], %s1746_s24, %s1746_s24, %s1747_s6  }
  0x13   :  { %s34_s29 = sshll.u32 %s2156_s1, 4  ;;  %s1749_s30 = smov [#allocation19]   ;;  %s35_s29 = int_to_ptr.hbm [resolvable:$true] %s34_s29 }
  0x14   :  { %s152_s0 = sshll.u32 %s1749_s30, 4  ;;  %s1750_s17 = smov [#allocation4]   ;;  %s153_s0 = int_to_ptr.vmem [resolvable:$true] %s152_s0 }
  0x15   :  { %155 = dma.hbm_to_vmem [thread:$0]  %s151_s8, 16, %s153_s0, [#allocation20]  }
  0x16   :  { %s36_s18 = sshll.u32 %s1750_s17, 4  ;;  %s62_s12 = sshll.u32 %s2160_s5, 4  ;;  %s37_s18 = int_to_ptr.vmem [resolvable:$true] %s36_s18  ;;  %s63_s12 = int_to_ptr.hbm [resolvable:$true] %s62_s12 }
  0x17   :  { %42 = dma.hbm_to_vmem [thread:$0]  %s35_s29, 256, %s37_s18, [#allocation5], %s1746_s24, %s1746_s24, %s1747_s6  }
  0x18   :  { %s86_s1 = sshll.u32 %s2162_s7, 4  ;;  %s1751_s22 = smov [#allocation9]   ;;  %s87_s1 = int_to_ptr.hbm [resolvable:$true] %s86_s1 }
  0x19   :  { %s64_s23 = sshll.u32 %s1751_s22, 4  ;;  %s1752_s25 = smov [#allocation12]   ;;  %s65_s23 = int_to_ptr.vmem [resolvable:$true] %s64_s23 }
  0x1a   :  { %70 = dma.hbm_to_vmem [thread:$0]  %s63_s12, 512, %s65_s23, [#allocation8], %s1746_s24, %s1746_s24, %s1747_s6  }
  0x1b   :  { %s88_s5 = sshll.u32 %s1752_s25, 4  ;;  %s113_s8 = sshll.u32 %s2164_s9, 4  ;;  %s89_s5 = int_to_ptr.vmem [resolvable:$true] %s88_s5  ;;  %s114_s8 = int_to_ptr.hbm [resolvable:$true] %s113_s8 }
  0x1c   :  { %94 = dma.hbm_to_vmem [thread:$0]  %s87_s1, 512, %s89_s5, [#allocation11], %s1746_s24, %s1746_s24, %s1747_s6  }
  0x1d   :  { %s136_s28 = sshll.u32 %s2166_s11, 4  ;;  %s1753_s29 = smov [#allocation15]   ;;  %s137_s28 = int_to_ptr.hbm [resolvable:$true] %s136_s28 }
  0x1e   :  { %s115_s30 = sshll.u32 %s1753_s29, 4  ;;  %s1754_s0 = smov [#allocation18]   ;;  %s116_s30 = int_to_ptr.vmem [resolvable:$true] %s115_s30 }
  0x1f   :  { %118 = dma.hbm_to_vmem [thread:$0]  %s114_s8, 16, %s116_s30, [#allocation14]  }
  0x20   :  { %s138_s17 = sshll.u32 %s1754_s0, 4  ;;  %s165_s9 = sshll.u32 %s2170_s15, 4  ;;  %s139_s17 = int_to_ptr.vmem [resolvable:$true] %s138_s17  ;;  %s166_s9 = int_to_ptr.hbm [resolvable:$true] %s165_s9 }
  0x21   :  { %144 = dma.hbm_to_vmem [thread:$0]  %s137_s28, 512, %s139_s17, [#allocation17], %s1746_s24, %s1746_s24, %s1747_s6  }
  0x22   :  { %s1755_s19 = smov [#allocation21]  }
  0x23   :  { %s167_s12 = sshll.u32 %s1755_s19, 4  ;;  %s168_s12 = int_to_ptr.vmem [resolvable:$true] %s167_s12 }
  0x24   :  { %170 = dma.hbm_to_vmem [thread:$0]  %s166_s9, 16, %s168_s12, [#allocation20]  }
  0x25   :  { %1729 = dma.done.wait [#allocation5], 256  }
  0x26   :  { %1730 = vsyncadd [#allocation5], 4294967040 }
  0x27   :  { %1731 = dma.done.wait [#allocation8], 528  }
  0x28   :  { %1732 = vsyncadd [#allocation8], 4294966768 }
  0x29   :  { %1733 = dma.done.wait [#allocation11], 528  }
  0x2a   :  { %1734 = vsyncadd [#allocation11], 4294966768 }
  0x2b   :  { %1735 = dma.done.wait [#allocation14], 528  }
  0x2c   :  { %1736 = vsyncadd [#allocation14], 4294966768 }
  0x2d   :  { %1737 = dma.done.wait [#allocation17], 1024  }
  0x2e   :  { %1738 = vsyncadd [#allocation17], 4294966272 }
  0x2f   :  { %1739 = dma.done.wait [#allocation20], 32  }
  0x30   :  { %1740 = vsyncadd [#allocation20], 4294967264  ;;  %v216_v0 = vld [vmem:[#allocation4 + $0x8] sm:$0xff]  ;;  %v215_v1 = vld [vmem:[#allocation4] sm:$0xff]  ;;  %s2174_s24 = sld [smem:[#allocation30_spill]]  ;;  %vm227_vm0 = vcmask 130048  }
  0x31   :  { %248 = vmatpush.msra.mxu0 %v216_v0  ;;  %v220_v3 = vld [vmem:[%s2157_s2 + $0x18] sm:$0xff]  ;;  %v219_v4 = vld [vmem:[%s2157_s2 + $0x10] sm:$0xff]  ;;  %v218_v5 = vld [vmem:[%s2157_s2 + $0x8] sm:$0xff]  ;;  %vm257_vm1 = vcmask 261120   ;;  %vm287_vm2 = vcmask 254976   ;;  %s1756_s23 = smov [#allocation22]  }
  0x32   :  { %277 = vmatpush.msra.mxu1 %v220_v3  ;;  %305 = vmatpush.msra.mxu2 %v220_v3  ;;  %v217_v6 = vld [vmem:[%s2157_s2] sm:$0xff]  ;;  %v1372_v8 = vld [vmem:[#allocation7] ss:$0 sm:$0xff]  ;;  %v481_v24 = vld [vmem:[%s2159_s4 + $0x18] sm:$0xff]  ;;  %s1297_s25 = sshll.u32 %s1756_s23, 4  ;;  %s1299_s27 = sshll.u32 %s2171_s16, 4  ;;  %s1298_s25 = int_to_ptr.vmem [resolvable:$true] %s1297_s25  ;;  %s1300_s27 = int_to_ptr.hbm [resolvable:$true] %s1299_s27 }
  0x33   :  { %249 = vmatpush.msra.mxu0 %v215_v1  ;;  %332 = vmatpush.msra.mxu3 %v220_v3  ;;  %v260_v7 = vld [vmem:[%s2168_s13] sm:$0x3]  ;;  %v480_v25 = vld [vmem:[%s2159_s4 + $0x10] sm:$0xff]  ;;  %v479_v26 = vld [vmem:[%s2159_s4 + $0x8] sm:$0xff]  ;;  %vm1290_vm3 = vcmask 74752  }
  0x34   :  { %278 = vmatpush.msra.mxu1 %v219_v4  ;;  %306 = vmatpush.msra.mxu2 %v219_v4  ;;  %v478_v27 = vld [vmem:[%s2159_s4] sm:$0xff]  ;;  %v1940_v35 = vld [vmem:[#allocation9 + $0x18] sm:$0xff]  ;;  %v1952_v38 = vld [vmem:[#allocation9] sm:$0xff] }
  0x35   :  { %333 = vmatpush.msra.mxu3 %v219_v4  ;;  %440 = vmatpush.msrb.mxu0 %v220_v3  ;;  %v1942_v36 = vld [vmem:[#allocation9 + $0x10] sm:$0xff]  ;;  %v1946_v37 = vld [vmem:[#allocation9 + $0x8] sm:$0xff]  ;;  %v1964_v42 = vld [vmem:[#allocation10] ss:$0 sm:$0xff] }
  0x36   :  { %v222_v2 = vld [vmem:[%s2174_s24] sm:$0xff]  ;;  %279 = vmatpush.msra.mxu1 %v218_v5  ;;  %307 = vmatpush.msra.mxu2 %v218_v5  ;;  %v223_v23 = vld [vmem:[%s2174_s24 + $0x8] sm:$0xff] }
  0x37   :  { %1314 = vmatmul.msk.f32.vlgmr.msra.gmra.mxu0 %vm227_vm0, %v222_v2  ;;  %334 = vmatpush.msra.mxu3 %v218_v5  ;;  %v1326_v46 = vld [vmem:[%s2168_s13 + $0x2] sm:$0x3] }
  0x38   :  { %280 = vmatpush.msra.mxu1 %v217_v6  ;;  %441 = vmatpush.msrb.mxu0 %v219_v4 }
  0x39   :  { %1316 = vmatmul.msk.f32.vlgmr.msra.gmra.mxu1 %vm257_vm1, %v260_v7  ;;  %308 = vmatpush.msra.mxu2 %v217_v6 }
  0x3a   :  { %335 = vmatpush.msra.mxu3 %v217_v6  ;;  %359 = vmatpush.msrb.mxu1 %v220_v3 }
  0x3b   :  { %386 = vmatpush.msrb.mxu2 %v220_v3  ;;  %442 = vmatpush.msrb.mxu0 %v218_v5 }
  0x3c   :  { %413 = vmatpush.msrb.mxu3 %v220_v3  ;;  %360 = vmatpush.msrb.mxu1 %v219_v4 }
  0x3d   :  { %387 = vmatpush.msrb.mxu2 %v219_v4  ;;  %443 = vmatpush.msrb.mxu0 %v217_v6 }
  0x3e   :  { %414 = vmatpush.msrb.mxu3 %v219_v4  ;;  %361 = vmatpush.msrb.mxu1 %v218_v5 }
  0x3f   :  { %388 = vmatpush.msrb.mxu2 %v218_v5  ;;  %1315 = vmatmul.msk.f32.gmra.mxu0 %vm227_vm0, %v223_v23 }
  0x40   :  { %415 = vmatpush.msrb.mxu3 %v218_v5  ;;  %362 = vmatpush.msrb.mxu1 %v217_v6 }
  0x41   :  { %389 = vmatpush.msrb.mxu2 %v217_v6  ;;  %568 = vmatpush.msra.mxu0 %v1940_v35 }
  0x42   :  { %416 = vmatpush.msrb.mxu3 %v217_v6  ;;  %467 = vmatpush.msra.mxu1 %v220_v3 }
  0x43   :  { %569 = vmatpush.msra.mxu0 %v1942_v36 }
  0x44   :  { %468 = vmatpush.msra.mxu1 %v219_v4 }
  0x45   :  { %570 = vmatpush.msra.mxu0 %v1946_v37 }
  0x46   :  { %469 = vmatpush.msra.mxu1 %v218_v5 }
  0x47   :  { %571 = vmatpush.msra.mxu0 %v1952_v38 }
  0x48   :  { %470 = vmatpush.msra.mxu1 %v217_v6 }
  0xb4   :  { %v251_v9 = vpop.f32.mrf.mxu0 }
  0xb5   :  { %v252_v10 = vadd.f32 %v1372_v8, %v251_v9  ;;  %v743_v9 = vld [vmem:[#allocation12 + $0x10] sm:$0xff] }
  0xb6   :  { %v282_v11 = vpop.f32.mrf.mxu1 }
  0xb7   :  { %258 = vst.msk [vmem:[#allocation2] sm:$0xff] %vm257_vm1, %v252_v10  ;;  %v742_v10 = vld [vmem:[#allocation12 + $0x8] sm:$0xff] }
  0xbc   :  { %v254_v33 = vpop.f32.mrf.mxu0 }
  0xbd   :  { %v255_v34 = vadd.f32 %v1372_v8, %v254_v33  ;;  %v744_v8 = vld [vmem:[#allocation12 + $0x18] sm:$0xff] }
  0xbe   :  { %v261_v12 = vld [vmem:[#allocation2] sm:$0x3]  ;;  %v289_v15 = vld [vmem:[#allocation2 + $0x2] sm:$0x3]  ;;  %v316_v19 = vld [vmem:[#allocation2 + $0x4] sm:$0x3] }
  0xbf   :  { %v285_v13 = vadd.f32 %v282_v11, %v261_v12  ;;  %v343_v28 = vld [vmem:[#allocation2 + $0x6] sm:$0x3]  ;;  %259 = vst.msk [vmem:[#allocation2 + $0x8] sm:$0xff] %vm257_vm1, %v255_v34  ;;  %v741_v11 = vld [vmem:[#allocation12] sm:$0xff] }
  0xc1   :  { %1377 = vtanh.f32 %v285_v13 }
  0xc6   :  { %v370_v39 = vld [vmem:[#allocation2 + $0x8] sm:$0x3]  ;;  %v397_v47 = vld [vmem:[#allocation2 + $0xa] sm:$0x3]  ;;  %v424_v55 = vld [vmem:[#allocation2 + $0xc] sm:$0x3] }
  0xc7   :  { %v1378_v14 = vpop.eup %1377  ;;  %v451_v63 = vld [vmem:[#allocation2 + $0xe] sm:$0x3] }
  0xc8   :  { %288 = vst.msk [vmem:[#allocation3] sm:$0x3] %vm287_vm2, %v1378_v14  ;;  %1317 = vmatmul.msk.f32.vlgmr.msra.gmra.mxu2 %vm257_vm1, %v1378_v14 }
  0xc9   :  { %510 = vmatpush.msra.mxu2 %v481_v24 }
  0xcb   :  { %511 = vmatpush.msra.mxu2 %v480_v25 }
  0xcd   :  { %512 = vmatpush.msra.mxu2 %v479_v26  ;;  %v2031_v26 = vld [vmem:[#allocation15] ss:$0 sm:$0xff] }
  0xcf   :  { %513 = vmatpush.msra.mxu2 %v478_v27 }
 0x14b   :  { %v310_v16 = vpop.f32.mrf.mxu2 }
 0x14c   :  { %v313_v17 = vadd.f32 %v310_v16, %v289_v15 }
 0x14e   :  { %1379 = vtanh.f32 %v313_v17 }
 0x154   :  { %v1380_v18 = vpop.eup %1379 }
 0x155   :  { %315 = vst.msk [vmem:[#allocation3 + $0x2] sm:$0x3] %vm287_vm2, %v1380_v18  ;;  %1318 = vmatmul.msk.f32.vlgmr.msra.gmra.mxu3 %vm257_vm1, %v1380_v18 }
 0x156   :  { %541 = vmatpush.msra.mxu3 %v1940_v35 }
 0x158   :  { %542 = vmatpush.msra.mxu3 %v1942_v36 }
 0x15a   :  { %543 = vmatpush.msra.mxu3 %v1946_v37 }
 0x15c   :  { %544 = vmatpush.msra.mxu3 %v1952_v38 }
 0x1d8   :  { %v337_v20 = vpop.f32.mrf.mxu3 }
 0x1d9   :  { %v340_v21 = vadd.f32 %v337_v20, %v316_v19  ;;  %v2007_v19 = vld [vmem:[#allocation13 + $0x18] sm:$0xff]  ;;  %v2009_v20 = vld [vmem:[#allocation13 + $0x10] sm:$0xff] }
 0x1db   :  { %1381 = vtanh.f32 %v340_v21  ;;  %v2013_v21 = vld [vmem:[#allocation13 + $0x8] sm:$0xff] }
 0x1e1   :  { %v1382_v22 = vpop.eup %1381 }
 0x1e2   :  { %342 = vst.msk [vmem:[#allocation3 + $0x4] sm:$0x3] %vm287_vm2, %v1382_v22  ;;  %1319 = vmatmul.msk.f32.vlgmr.msrb.gmra.mxu1 %vm257_vm1, %v1382_v22  ;;  %v2019_v22 = vld [vmem:[#allocation13] sm:$0xff] }
 0x1e3   :  { %595 = vmatpush.msrb.mxu1 %v1940_v35 }
 0x1e5   :  { %596 = vmatpush.msrb.mxu1 %v1942_v36 }
 0x1e7   :  { %597 = vmatpush.msrb.mxu1 %v1946_v37 }
 0x1e9   :  { %598 = vmatpush.msrb.mxu1 %v1952_v38 }
 0x25f   :  { %v364_v29 = vpop.f32.mrf.mxu1 }
 0x260   :  { %v367_v30 = vadd.f32 %v364_v29, %v343_v28 }
 0x262   :  { %1383 = vtanh.f32 %v367_v30  ;;  %v1337_v30 = vld [vmem:[%s2168_s13 + $0x4] sm:$0x3] }
 0x268   :  { %v1384_v31 = vpop.eup %1383 }
 0x269   :  { %369 = vst.msk [vmem:[#allocation3 + $0x6] sm:$0x3] %vm287_vm2, %v1384_v31  ;;  %1320 = vmatmul.msk.f32.vlgmr.msrb.gmra.mxu2 %vm257_vm1, %v1384_v31 }
 0x26a   :  { %703 = vmatpush.msrb.mxu2 %v1940_v35 }
 0x26c   :  { %704 = vmatpush.msrb.mxu2 %v1942_v36 }
 0x26e   :  { %705 = vmatpush.msrb.mxu2 %v1946_v37 }
 0x270   :  { %v487_v32 = vld [vmem:[#allocation3] sm:$0xff]  ;;  %706 = vmatpush.msrb.mxu2 %v1952_v38 }
 0x271   :  { %1324 = vmatmul.msk.f32.vlgmr.msra.gmra.mxu2 %vm257_vm1, %v487_v32 }
 0x272   :  { %831 = vmatpush.msra.mxu2 %v2007_v19 }
 0x274   :  { %832 = vmatpush.msra.mxu2 %v2009_v20 }
 0x276   :  { %833 = vmatpush.msra.mxu2 %v2013_v21 }
 0x278   :  { %834 = vmatpush.msra.mxu2 %v2019_v22 }
 0x2ec   :  { %v391_v40 = vpop.f32.mrf.mxu2 }
 0x2ed   :  { %v394_v41 = vadd.f32 %v391_v40, %v370_v39 }
 0x2ef   :  { %1385 = vtanh.f32 %v394_v41 }
 0x2f4   :  { %v515_v43 = vpop.f32.mrf.mxu2 }
 0x2f5   :  { %v1386_v44 = vpop.eup %1385  ;;  %v516_v45 = vadd.f32 %v1964_v42, %v515_v43 }
 0x2f6   :  { %396 = vst.msk [vmem:[#allocation3 + $0x8] sm:$0x3] %vm287_vm2, %v1386_v44  ;;  %1321 = vmatmul.msk.f32.vlgmr.msrb.gmra.mxu3 %vm257_vm1, %v1386_v44 }
 0x2f7   :  { %521 = vst.msk [vmem:[#allocation2] sm:$0xff] %vm257_vm1, %v516_v45  ;;  %622 = vmatpush.msrb.mxu3 %v1940_v35 }
 0x2f9   :  { %623 = vmatpush.msrb.mxu3 %v1942_v36 }
 0x2fb   :  { %624 = vmatpush.msrb.mxu3 %v1946_v37 }
 0x2fd   :  { %625 = vmatpush.msrb.mxu3 %v1952_v38 }
 0x2fe   :  { %1327 = vmatmul.msk.f32.vlgmr.msra.gmra.mxu3 %vm257_vm1, %v1326_v46  ;;  %v525_v50 = vld [vmem:[#allocation2] sm:$0x3]  ;;  %v552_v58 = vld [vmem:[#allocation2 + $0x2] sm:$0x3]  ;;  %v579_v2 = vld [vmem:[#allocation2 + $0x4] sm:$0x3] }
 0x2ff   :  { %730 = vmatpush.msra.mxu3 %v1940_v35  ;;  %v606_v13 = vld [vmem:[#allocation2 + $0x6] sm:$0x3] }
 0x301   :  { %731 = vmatpush.msra.mxu3 %v1942_v36 }
 0x303   :  { %732 = vmatpush.msra.mxu3 %v1946_v37 }
 0x305   :  { %733 = vmatpush.msra.mxu3 %v1952_v38 }
 0x379   :  { %v418_v48 = vpop.f32.mrf.mxu3 }
 0x37a   :  { %v421_v49 = vadd.f32 %v418_v48, %v397_v47 }
 0x37c   :  { %1387 = vtanh.f32 %v421_v49 }
 0x381   :  { %v546_v51 = vpop.f32.mrf.mxu3 }
 0x382   :  { %v1388_v52 = vpop.eup %1387  ;;  %v549_v53 = vadd.f32 %v546_v51, %v525_v50 }
 0x383   :  { %423 = vst.msk [vmem:[#allocation3 + $0xa] sm:$0x3] %vm287_vm2, %v1388_v52  ;;  %1322 = vmatmul.msk.f32.vlgmr.msrb.gmra.mxu0 %vm257_vm1, %v1388_v52 }
 0x384   :  { %1389 = vtanh.f32 %v549_v53  ;;  %649 = vmatpush.msrb.mxu0 %v1940_v35 }
 0x386   :  { %650 = vmatpush.msrb.mxu0 %v1942_v36 }
 0x388   :  { %651 = vmatpush.msrb.mxu0 %v1946_v37 }
 0x38a   :  { %v1390_v54 = vpop.eup %1389  ;;  %652 = vmatpush.msrb.mxu0 %v1952_v38 }
 0x38b   :  { %551 = vst.msk [vmem:[#allocation3] sm:$0x3] %vm287_vm2, %v1390_v54  ;;  %1328 = vmatmul.msk.f32.vlgmr.msra.gmra.mxu0 %vm257_vm1, %v1390_v54 }
 0x38c   :  { %773 = vmatpush.msra.mxu0 %v744_v8 }
 0x38e   :  { %774 = vmatpush.msra.mxu0 %v743_v9 }
 0x390   :  { %775 = vmatpush.msra.mxu0 %v742_v10  ;;  %v2098_v10 = vld [vmem:[#allocation19] ss:$0 sm:$0xff] }
 0x392   :  { %776 = vmatpush.msra.mxu0 %v741_v11 }
 0x400   :  { %v445_v56 = vpop.f32.mrf.mxu0 }
 0x401   :  { %v448_v57 = vadd.f32 %v445_v56, %v424_v55  ;;  %v1007_v56 = vld [vmem:[#allocation16 + $0x18] sm:$0xff] }
 0x403   :  { %1391 = vtanh.f32 %v448_v57  ;;  %v1006_v57 = vld [vmem:[#allocation16 + $0x10] sm:$0xff] }
 0x408   :  { %v573_v59 = vpop.f32.mrf.mxu0 }
 0x409   :  { %v1392_v60 = vpop.eup %1391  ;;  %v576_v61 = vadd.f32 %v573_v59, %v552_v58  ;;  %v1005_v58 = vld [vmem:[#allocation16 + $0x8] sm:$0xff]  ;;  %v1004_v59 = vld [vmem:[#allocation16] sm:$0xff] }
 0x40a   :  { %450 = vst.msk [vmem:[#allocation3 + $0xc] sm:$0x3] %vm287_vm2, %v1392_v60  ;;  %1323 = vmatmul.msk.f32.vlgmr.msra.gmra.mxu1 %vm257_vm1, %v1392_v60 }
 0x40b   :  { %1393 = vtanh.f32 %v576_v61  ;;  %676 = vmatpush.msra.mxu1 %v1940_v35 }
 0x40d   :  { %677 = vmatpush.msra.mxu1 %v1942_v36 }
 0x40f   :  { %678 = vmatpush.msra.mxu1 %v1946_v37 }
 0x411   :  { %v1394_v62 = vpop.eup %1393  ;;  %679 = vmatpush.msra.mxu1 %v1952_v38 }
 0x412   :  { %578 = vst.msk [vmem:[#allocation3 + $0x2] sm:$0x3] %vm287_vm2, %v1394_v62  ;;  %1329 = vmatmul.msk.f32.vlgmr.msrb.gmra.mxu1 %vm257_vm1, %v1394_v62 }
 0x413   :  { %804 = vmatpush.msrb.mxu1 %v2007_v19 }
 0x415   :  { %805 = vmatpush.msrb.mxu1 %v2009_v20 }
 0x417   :  { %806 = vmatpush.msrb.mxu1 %v2013_v21 }
 0x419   :  { %807 = vmatpush.msrb.mxu1 %v2019_v22 }
 0x487   :  { %v472_v0 = vpop.f32.mrf.mxu1 }
 0x488   :  { %v475_v1 = vadd.f32 %v472_v0, %v451_v63 }
 0x48a   :  { %1395 = vtanh.f32 %v475_v1 }
 0x48f   :  { %v600_v3 = vpop.f32.mrf.mxu1 }
 0x490   :  { %v1396_v4 = vpop.eup %1395  ;;  %v603_v5 = vadd.f32 %v600_v3, %v579_v2  ;;  %v2074_v3 = vld [vmem:[#allocation18 + $0x18] sm:$0xff] }
 0x491   :  { %477 = vst.msk [vmem:[#allocation3 + $0xe] sm:$0x3] %vm287_vm2, %v1396_v4  ;;  %v2076_v4 = vld [vmem:[#allocation18 + $0x10] sm:$0xff] }
 0x492   :  { %1397 = vtanh.f32 %v603_v5  ;;  %v2080_v5 = vld [vmem:[#allocation18 + $0x8] sm:$0xff] }
 0x498   :  { %v1398_v6 = vpop.eup %1397  ;;  %v488_v7 = vld [vmem:[#allocation3 + $0x8] sm:$0xff] }
 0x499   :  { %605 = vst.msk [vmem:[#allocation3 + $0x4] sm:$0x3] %vm287_vm2, %v1398_v6  ;;  %1325 = vmatmul.msk.f32.gmra.mxu2 %vm257_vm1, %v488_v7  ;;  %1330 = vmatmul.msk.f32.vlgmr.msrb.gmra.mxu3 %vm257_vm1, %v1398_v6  ;;  %v2086_v6 = vld [vmem:[#allocation18] sm:$0xff] }
 0x49a   :  { %858 = vmatpush.msrb.mxu3 %v2007_v19 }
 0x49c   :  { %859 = vmatpush.msrb.mxu3 %v2009_v20 }
 0x49e   :  { %860 = vmatpush.msrb.mxu3 %v2013_v21 }
 0x4a0   :  { %861 = vmatpush.msrb.mxu3 %v2019_v22 }
 0x51c   :  { %v518_v12 = vpop.f32.mrf.mxu2  ;;  %v627_v14 = vpop.f32.mrf.mxu3 }
 0x51d   :  { %v519_v15 = vadd.f32 %v1964_v42, %v518_v12  ;;  %v630_v16 = vadd.f32 %v627_v14, %v606_v13  ;;  %v1348_v14 = vld [vmem:[%s2168_s13 + $0x6] sm:$0x3] }
 0x51f   :  { %522 = vst.msk [vmem:[#allocation2 + $0x8] sm:$0xff] %vm257_vm1, %v519_v15  ;;  %1399 = vtanh.f32 %v630_v16 }
 0x525   :  { %v1400_v17 = vpop.eup %1399 }
 0x526   :  { %632 = vst.msk [vmem:[#allocation3 + $0x6] sm:$0x3] %vm287_vm2, %v1400_v17  ;;  %1331 = vmatmul.msk.f32.vlgmr.msrb.gmra.mxu0 %vm257_vm1, %v1400_v17  ;;  %v633_v23 = vld [vmem:[#allocation2 + $0x8] sm:$0x3]  ;;  %v660_v31 = vld [vmem:[#allocation2 + $0xa] sm:$0x3] }
 0x527   :  { %966 = vmatpush.msrb.mxu0 %v2007_v19  ;;  %v687_v39 = vld [vmem:[#allocation2 + $0xc] sm:$0x3]  ;;  %v714_v47 = vld [vmem:[#allocation2 + $0xe] sm:$0x3] }
 0x529   :  { %967 = vmatpush.msrb.mxu0 %v2009_v20 }
 0x52b   :  { %968 = vmatpush.msrb.mxu0 %v2013_v21 }
 0x52d   :  { %v750_v18 = vld [vmem:[#allocation3] sm:$0xff]  ;;  %969 = vmatpush.msrb.mxu0 %v2019_v22 }
 0x52e   :  { %1335 = vmatmul.msk.f32.vlgmr.msra.gmra.mxu0 %vm257_vm1, %v750_v18 }
 0x52f   :  { %1093 = vmatpush.msra.mxu0 %v2074_v3 }
 0x531   :  { %1094 = vmatpush.msra.mxu0 %v2076_v4 }
 0x533   :  { %1095 = vmatpush.msra.mxu0 %v2080_v5 }
 0x535   :  { %1096 = vmatpush.msra.mxu0 %v2086_v6 }
 0x5a3   :  { %v654_v24 = vpop.f32.mrf.mxu0 }
 0x5a4   :  { %v657_v25 = vadd.f32 %v654_v24, %v633_v23 }
 0x5a6   :  { %1401 = vtanh.f32 %v657_v25 }
 0x5ab   :  { %v778_v27 = vpop.f32.mrf.mxu0 }
 0x5ac   :  { %v1402_v28 = vpop.eup %1401  ;;  %v779_v29 = vadd.f32 %v2031_v26, %v778_v27 }
 0x5ad   :  { %659 = vst.msk [vmem:[#allocation3 + $0x8] sm:$0x3] %vm287_vm2, %v1402_v28  ;;  %1332 = vmatmul.msk.f32.vlgmr.msra.gmra.mxu1 %vm257_vm1, %v1402_v28 }
 0x5ae   :  { %784 = vst.msk [vmem:[#allocation2] sm:$0xff] %vm257_vm1, %v779_v29  ;;  %885 = vmatpush.msra.mxu1 %v2007_v19 }
 0x5b0   :  { %886 = vmatpush.msra.mxu1 %v2009_v20 }
 0x5b2   :  { %887 = vmatpush.msra.mxu1 %v2013_v21 }
 0x5b4   :  { %888 = vmatpush.msra.mxu1 %v2019_v22 }
 0x5b5   :  { %1338 = vmatmul.msk.f32.vlgmr.msrb.gmra.mxu1 %vm257_vm1, %v1337_v30  ;;  %v788_v34 = vld [vmem:[#allocation2] sm:$0x3]  ;;  %v815_v42 = vld [vmem:[#allocation2 + $0x2] sm:$0x3]  ;;  %v842_v50 = vld [vmem:[#allocation2 + $0x4] sm:$0x3] }
 0x5b6   :  { %993 = vmatpush.msrb.mxu1 %v2007_v19  ;;  %v869_v61 = vld [vmem:[#allocation2 + $0x6] sm:$0x3] }
 0x5b8   :  { %994 = vmatpush.msrb.mxu1 %v2009_v20 }
 0x5ba   :  { %995 = vmatpush.msrb.mxu1 %v2013_v21 }
 0x5bc   :  { %996 = vmatpush.msrb.mxu1 %v2019_v22 }
 0x62a   :  { %v681_v32 = vpop.f32.mrf.mxu1 }
 0x62b   :  { %v684_v33 = vadd.f32 %v681_v32, %v660_v31 }
 0x62d   :  { %1403 = vtanh.f32 %v684_v33 }
 0x632   :  { %v809_v35 = vpop.f32.mrf.mxu1 }
 0x633   :  { %v1404_v36 = vpop.eup %1403  ;;  %v812_v37 = vadd.f32 %v809_v35, %v788_v34 }
 0x634   :  { %686 = vst.msk [vmem:[#allocation3 + $0xa] sm:$0x3] %vm287_vm2, %v1404_v36  ;;  %1333 = vmatmul.msk.f32.vlgmr.msrb.gmra.mxu2 %vm257_vm1, %v1404_v36 }
 0x635   :  { %1405 = vtanh.f32 %v812_v37  ;;  %912 = vmatpush.msrb.mxu2 %v2007_v19 }
 0x637   :  { %913 = vmatpush.msrb.mxu2 %v2009_v20 }
 0x639   :  { %914 = vmatpush.msrb.mxu2 %v2013_v21 }
 0x63b   :  { %v1406_v38 = vpop.eup %1405  ;;  %915 = vmatpush.msrb.mxu2 %v2019_v22 }
 0x63c   :  { %814 = vst.msk [vmem:[#allocation3] sm:$0x3] %vm287_vm2, %v1406_v38  ;;  %1339 = vmatmul.msk.f32.vlgmr.msra.gmra.mxu2 %vm257_vm1, %v1406_v38 }
 0x63d   :  { %1036 = vmatpush.msra.mxu2 %v1007_v56 }
 0x63f   :  { %1037 = vmatpush.msra.mxu2 %v1006_v57 }
 0x641   :  { %1038 = vmatpush.msra.mxu2 %v1005_v58  ;;  %v1262_v58 = vld [vmem:[%s2169_s14 + $0x18] sm:$0xff] }
 0x643   :  { %1039 = vmatpush.msra.mxu2 %v1004_v59  ;;  %v1261_v59 = vld [vmem:[%s2169_s14 + $0x10] sm:$0xff] }
 0x6b7   :  { %v708_v40 = vpop.f32.mrf.mxu2 }
 0x6b8   :  { %v711_v41 = vadd.f32 %v708_v40, %v687_v39 }
 0x6ba   :  { %1407 = vtanh.f32 %v711_v41 }
 0x6bf   :  { %v836_v43 = vpop.f32.mrf.mxu2 }
 0x6c0   :  { %v1408_v44 = vpop.eup %1407  ;;  %v839_v45 = vadd.f32 %v836_v43, %v815_v42 }
 0x6c1   :  { %713 = vst.msk [vmem:[#allocation3 + $0xc] sm:$0x3] %vm287_vm2, %v1408_v44  ;;  %1334 = vmatmul.msk.f32.vlgmr.msra.gmra.mxu3 %vm257_vm1, %v1408_v44 }
 0x6c2   :  { %1409 = vtanh.f32 %v839_v45  ;;  %939 = vmatpush.msra.mxu3 %v2007_v19 }
 0x6c4   :  { %940 = vmatpush.msra.mxu3 %v2009_v20 }
 0x6c6   :  { %941 = vmatpush.msra.mxu3 %v2013_v21 }
 0x6c8   :  { %v1410_v46 = vpop.eup %1409  ;;  %942 = vmatpush.msra.mxu3 %v2019_v22 }
 0x6c9   :  { %841 = vst.msk [vmem:[#allocation3 + $0x2] sm:$0x3] %vm287_vm2, %v1410_v46  ;;  %1340 = vmatmul.msk.f32.vlgmr.msrb.gmra.mxu3 %vm257_vm1, %v1410_v46 }
 0x6ca   :  { %1067 = vmatpush.msrb.mxu3 %v2074_v3 }
 0x6cc   :  { %1068 = vmatpush.msrb.mxu3 %v2076_v4 }
 0x6ce   :  { %1069 = vmatpush.msrb.mxu3 %v2080_v5 }
 0x6d0   :  { %1070 = vmatpush.msrb.mxu3 %v2086_v6 }
 0x744   :  { %v735_v48 = vpop.f32.mrf.mxu3 }
 0x745   :  { %v738_v49 = vadd.f32 %v735_v48, %v714_v47 }
 0x747   :  { %1411 = vtanh.f32 %v738_v49 }
 0x74c   :  { %v863_v51 = vpop.f32.mrf.mxu3 }
 0x74d   :  { %v1412_v52 = vpop.eup %1411  ;;  %v866_v53 = vadd.f32 %v863_v51, %v842_v50 }
 0x74e   :  { %740 = vst.msk [vmem:[#allocation3 + $0xe] sm:$0x3] %vm287_vm2, %v1412_v52 }
 0x74f   :  { %1413 = vtanh.f32 %v866_v53 }
 0x755   :  { %v1414_v54 = vpop.eup %1413  ;;  %v751_v55 = vld [vmem:[#allocation3 + $0x8] sm:$0xff] }
 0x756   :  { %868 = vst.msk [vmem:[#allocation3 + $0x4] sm:$0x3] %vm287_vm2, %v1414_v54  ;;  %1336 = vmatmul.msk.f32.gmra.mxu0 %vm257_vm1, %v751_v55  ;;  %1341 = vmatmul.msk.f32.vlgmr.msra.gmra.mxu1 %vm257_vm1, %v1414_v54 }
 0x757   :  { %1119 = vmatpush.msra.mxu1 %v2074_v3 }
 0x759   :  { %1120 = vmatpush.msra.mxu1 %v2076_v4 }
 0x75b   :  { %1121 = vmatpush.msra.mxu1 %v2080_v5 }
 0x75d   :  { %1122 = vmatpush.msra.mxu1 %v2086_v6 }
 0x7d3   :  { %v781_v60 = vpop.f32.mrf.mxu0  ;;  %v890_v62 = vpop.f32.mrf.mxu1 }
 0x7d4   :  { %v782_v63 = vadd.f32 %v2031_v26, %v781_v60  ;;  %v893_v0 = vadd.f32 %v890_v62, %v869_v61  ;;  %v1260_v60 = vld [vmem:[%s2169_s14 + $0x8] sm:$0xff]  ;;  %v1259_v61 = vld [vmem:[%s2169_s14] sm:$0xff] }
 0x7d6   :  { %785 = vst.msk [vmem:[#allocation2 + $0x8] sm:$0xff] %vm257_vm1, %v782_v63  ;;  %1415 = vtanh.f32 %v893_v0 }
 0x7dc   :  { %v1416_v1 = vpop.eup %1415 }
 0x7dd   :  { %895 = vst.msk [vmem:[#allocation3 + $0x6] sm:$0x3] %vm287_vm2, %v1416_v1  ;;  %1342 = vmatmul.msk.f32.vlgmr.msrb.gmra.mxu2 %vm257_vm1, %v1416_v1  ;;  %v896_v7 = vld [vmem:[#allocation2 + $0x8] sm:$0x3]  ;;  %v923_v15 = vld [vmem:[#allocation2 + $0xa] sm:$0x3] }
 0x7de   :  { %1223 = vmatpush.msrb.mxu2 %v2074_v3  ;;  %v950_v23 = vld [vmem:[#allocation2 + $0xc] sm:$0x3]  ;;  %v977_v31 = vld [vmem:[#allocation2 + $0xe] sm:$0x3] }
 0x7e0   :  { %1224 = vmatpush.msrb.mxu2 %v2076_v4 }
 0x7e2   :  { %1225 = vmatpush.msrb.mxu2 %v2080_v5 }
 0x7e4   :  { %v1013_v2 = vld [vmem:[#allocation3] sm:$0xff]  ;;  %1226 = vmatpush.msrb.mxu2 %v2086_v6 }
 0x7e5   :  { %1346 = vmatmul.msk.f32.vlgmr.msra.gmra.mxu2 %vm257_vm1, %v1013_v2  ;;  %v1376_v2 = vld [vmem:[#allocation21] ss:$0 sm:$0xff] }
 0x860   :  { %v917_v8 = vpop.f32.mrf.mxu2 }
 0x861   :  { %v920_v9 = vadd.f32 %v917_v8, %v896_v7 }
 0x863   :  { %1417 = vtanh.f32 %v920_v9 }
 0x868   :  { %v1041_v11 = vpop.f32.mrf.mxu2 }
 0x869   :  { %v1418_v12 = vpop.eup %1417  ;;  %v1042_v13 = vadd.f32 %v2098_v10, %v1041_v11 }
 0x86a   :  { %922 = vst.msk [vmem:[#allocation3 + $0x8] sm:$0x3] %vm287_vm2, %v1418_v12  ;;  %1343 = vmatmul.msk.f32.vlgmr.msra.gmra.mxu3 %vm257_vm1, %v1418_v12 }
 0x86b   :  { %1047 = vst.msk [vmem:[#allocation2] sm:$0xff] %vm257_vm1, %v1042_v13  ;;  %1145 = vmatpush.msra.mxu3 %v2074_v3 }
 0x86d   :  { %1146 = vmatpush.msra.mxu3 %v2076_v4 }
 0x86f   :  { %1147 = vmatpush.msra.mxu3 %v2080_v5 }
 0x871   :  { %1148 = vmatpush.msra.mxu3 %v2086_v6 }
 0x872   :  { %1349 = vmatmul.msk.f32.vlgmr.msrb.gmra.mxu3 %vm257_vm1, %v1348_v14  ;;  %v1051_v18 = vld [vmem:[#allocation2] sm:$0x3]  ;;  %v1077_v26 = vld [vmem:[#allocation2 + $0x2] sm:$0x3]  ;;  %v1103_v34 = vld [vmem:[#allocation2 + $0x4] sm:$0x3] }
 0x873   :  { %1249 = vmatpush.msrb.mxu3 %v2074_v3  ;;  %v1129_v41 = vld [vmem:[#allocation2 + $0x6] sm:$0x3] }
 0x875   :  { %1250 = vmatpush.msrb.mxu3 %v2076_v4 }
 0x877   :  { %1251 = vmatpush.msrb.mxu3 %v2080_v5 }
 0x879   :  { %1252 = vmatpush.msrb.mxu3 %v2086_v6 }
 0x8ed   :  { %v944_v16 = vpop.f32.mrf.mxu3 }
 0x8ee   :  { %v947_v17 = vadd.f32 %v944_v16, %v923_v15 }
 0x8f0   :  { %1419 = vtanh.f32 %v947_v17 }
 0x8f5   :  { %v1072_v19 = vpop.f32.mrf.mxu3 }
 0x8f6   :  { %v1420_v20 = vpop.eup %1419  ;;  %v1075_v21 = vadd.f32 %v1072_v19, %v1051_v18 }
 0x8f7   :  { %949 = vst.msk [vmem:[#allocation3 + $0xa] sm:$0x3] %vm287_vm2, %v1420_v20  ;;  %1344 = vmatmul.msk.f32.vlgmr.msrb.gmra.mxu0 %vm257_vm1, %v1420_v20 }
 0x8f8   :  { %1421 = vtanh.f32 %v1075_v21  ;;  %1171 = vmatpush.msrb.mxu0 %v2074_v3 }
 0x8fa   :  { %1172 = vmatpush.msrb.mxu0 %v2076_v4 }
 0x8fc   :  { %1173 = vmatpush.msrb.mxu0 %v2080_v5 }
 0x8fe   :  { %v1422_v22 = vpop.eup %1421  ;;  %1174 = vmatpush.msrb.mxu0 %v2086_v6 }
 0x8ff   :  { %1350 = vmatmul.msk.f32.vlgmr.msra.gmra.mxu0 %vm257_vm1, %v1422_v22 }
 0x900   :  { %1282 = vmatpush.msra.mxu0 %v1262_v58 }
 0x902   :  { %1283 = vmatpush.msra.mxu0 %v1261_v59 }
 0x904   :  { %1284 = vmatpush.msra.mxu0 %v1260_v60 }
 0x906   :  { %1285 = vmatpush.msra.mxu0 %v1259_v61 }
 0x974   :  { %v971_v24 = vpop.f32.mrf.mxu0 }
 0x975   :  { %v974_v25 = vadd.f32 %v971_v24, %v950_v23 }
 0x977   :  { %1423 = vtanh.f32 %v974_v25 }
 0x97c   :  { %v1098_v27 = vpop.f32.mrf.mxu0 }
 0x97d   :  { %v1424_v28 = vpop.eup %1423  ;;  %v1101_v29 = vadd.f32 %v1098_v27, %v1077_v26 }
 0x97e   :  { %976 = vst.msk [vmem:[#allocation3 + $0xc] sm:$0x3] %vm287_vm2, %v1424_v28  ;;  %1345 = vmatmul.msk.f32.vlgmr.msrb.gmra.mxu1 %vm257_vm1, %v1424_v28 }
 0x97f   :  { %1425 = vtanh.f32 %v1101_v29  ;;  %1197 = vmatpush.msrb.mxu1 %v2074_v3 }
 0x981   :  { %1198 = vmatpush.msrb.mxu1 %v2076_v4 }
 0x983   :  { %1199 = vmatpush.msrb.mxu1 %v2080_v5 }
 0x985   :  { %v1426_v30 = vpop.eup %1425  ;;  %1200 = vmatpush.msrb.mxu1 %v2086_v6 }
 0x986   :  { %1351 = vmatmul.msk.f32.vlgmr.msra.gmra.mxu1 %vm257_vm1, %v1426_v30 }
 0x9fb   :  { %v998_v32 = vpop.f32.mrf.mxu1 }
 0x9fc   :  { %v1001_v33 = vadd.f32 %v998_v32, %v977_v31 }
 0x9fe   :  { %1427 = vtanh.f32 %v1001_v33 }
 0xa03   :  { %v1124_v35 = vpop.f32.mrf.mxu1 }
 0xa04   :  { %v1428_v36 = vpop.eup %1427  ;;  %v1127_v37 = vadd.f32 %v1124_v35, %v1103_v34 }
 0xa05   :  { %1003 = vst.msk [vmem:[#allocation3 + $0xe] sm:$0x3] %vm287_vm2, %v1428_v36 }
 0xa06   :  { %1429 = vtanh.f32 %v1127_v37 }
 0xa0c   :  { %v1430_v38 = vpop.eup %1429  ;;  %v1014_v39 = vld [vmem:[#allocation3 + $0x8] sm:$0xff] }
 0xa0d   :  { %1347 = vmatmul.msk.f32.gmra.mxu2 %vm257_vm1, %v1014_v39  ;;  %1352 = vmatmul.msk.f32.vlgmr.msra.gmra.mxu3 %vm257_vm1, %v1430_v38 }
 0xa90   :  { %v1044_v40 = vpop.f32.mrf.mxu2  ;;  %v1150_v42 = vpop.f32.mrf.mxu3 }
 0xa91   :  { %v1045_v43 = vadd.f32 %v2098_v10, %v1044_v40  ;;  %v1153_v44 = vadd.f32 %v1150_v42, %v1129_v41 }
 0xa93   :  { %1048 = vst.msk [vmem:[#allocation2 + $0x8] sm:$0xff] %vm257_vm1, %v1045_v43  ;;  %1431 = vtanh.f32 %v1153_v44 }
 0xa99   :  { %v1432_v45 = vpop.eup %1431 }
 0xa9a   :  { %1353 = vmatmul.msk.f32.vlgmr.msrb.gmra.mxu0 %vm257_vm1, %v1432_v45  ;;  %v1155_v46 = vld [vmem:[#allocation2 + $0x8] sm:$0x3]  ;;  %v1181_v50 = vld [vmem:[#allocation2 + $0xa] sm:$0x3]  ;;  %v1207_v54 = vld [vmem:[#allocation2 + $0xc] sm:$0x3] }
 0xa9b   :  { %v1233_v62 = vld [vmem:[#allocation2 + $0xe] sm:$0x3] }
 0xb17   :  { %v1176_v47 = vpop.f32.mrf.mxu0 }
 0xb18   :  { %v1179_v48 = vadd.f32 %v1176_v47, %v1155_v46 }
 0xb1a   :  { %1433 = vtanh.f32 %v1179_v48 }
 0xb20   :  { %v1434_v49 = vpop.eup %1433 }
 0xb21   :  { %1354 = vmatmul.msk.f32.vlgmr.msrb.gmra.mxu1 %vm257_vm1, %v1434_v49 }
 0xb9e   :  { %v1202_v51 = vpop.f32.mrf.mxu1 }
 0xb9f   :  { %v1205_v52 = vadd.f32 %v1202_v51, %v1181_v50 }
 0xba1   :  { %1435 = vtanh.f32 %v1205_v52 }
 0xba7   :  { %v1436_v53 = vpop.eup %1435 }
 0xba8   :  { %1355 = vmatmul.msk.f32.vlgmr.msrb.gmra.mxu2 %vm257_vm1, %v1436_v53 }
 0xc2b   :  { %v1228_v55 = vpop.f32.mrf.mxu2 }
 0xc2c   :  { %v1231_v56 = vadd.f32 %v1228_v55, %v1207_v54 }
 0xc2e   :  { %1437 = vtanh.f32 %v1231_v56 }
 0xc34   :  { %v1438_v57 = vpop.eup %1437 }
 0xc35   :  { %1356 = vmatmul.msk.f32.vlgmr.msrb.gmra.mxu3 %vm257_vm1, %v1438_v57 }
 0xcb8   :  { %v1254_v63 = vpop.f32.mrf.mxu3 }
 0xcb9   :  { %v1257_v0 = vadd.f32 %v1254_v63, %v1233_v62 }
 0xcbb   :  { %1439 = vtanh.f32 %v1257_v0 }
 0xcc1   :  { %v1440_v1 = vpop.eup %1439 }
 0xcc2   :  { %1357 = vmatmul.msk.f32.vlgmr.msra.gmra.mxu0 %vm257_vm1, %v1440_v1 }
 0xd3f   :  { %v1287_v3 = vpop.f32.mrf.mxu0 }
 0xd40   :  { %v1288_v4 = vadd.f32 %v1376_v2, %v1287_v3 }
 0xd42   :  { %1291 = vst.msk [vmem:[#allocation22] sm:$0x3] %vm1290_vm3, %v1288_v4 }
 0xd43   :  { %1302 = dma.vmem_to_hbm [thread:$0]  %s1298_s25, 32, %s1300_s27, [#allocation6]  }
 0xd44   :  { %1741 = dma.done.wait [#allocation6], 32  }
 0xd45   :  { %1742 = vsyncadd [#allocation6], 4294967264 }
 0xd46   :  { %1307 = vsyncpa [#allocation5], 1 }
 0xd47   :  { %1308 = vsyncpa [#allocation8], 1 }
 0xd48   :  { %1309 = vsyncpa [#allocation11], 1 }
 0xd49   :  { %1310 = vsyncpa [#allocation14], 1 }
 0xd4a   :  { %1311 = vsyncpa [#allocation17], 1 }
 0xd4b   :  { %1312 = vsyncpa [#allocation20], 1 }
 0xd4c   :  { %1313 = vsyncpa [#allocation6], 1 }

</bundles_post_ra>
